<compile_context>
chip_gen: v5e
topology: v5e:2x2
jax: 0.10.0
libtpu: 0.0.40
codegen_flags: <defaults>
</compile_context>

<pallas_src>
import functools
import math

import jax
import jax.numpy as jnp
from jax.experimental import pallas as pl
from jax.experimental.pallas import tpu as pltpu


LANE = 128      # TPU lane width; feature dims are padded to a multiple of this.
SUBLANE = 8
_FAST_PATH_VMEM_BUDGET = 48 << 20   # conservative: fits v7x's 64 MiB physical VMEM
_VMEM_LIMIT_CAP = 56 << 20


def _round_up(x, m):
    return ((x + m - 1) // m) * m


def _pad_to(a, shape):
    return jnp.pad(a, [(0, s - d) for d, s in zip(a.shape, shape)])


# ----------------------------------------------------------------------------
# Path 1: fully fused kernel (adj resident in VMEM, single grid step)
# ----------------------------------------------------------------------------
def _gnnp_fused_kernel(adj_ref, xw1_ref, w3_ref, w2_ref, o_ref):
    adj = adj_ref[...]                                    # (N, N) bf16

    # m1: relu(adj @ (x @ W1))   -- x @ W1 was precomputed in the wrapper.
    h = jnp.dot(adj, xw1_ref[...], preferred_element_type=jnp.float32)
    h = jnp.maximum(h, 0.0)

    # m3: relu(adj @ (h @ W3))
    hw = jnp.dot(h, w3_ref[...], preferred_element_type=jnp.float32)
    h = jnp.dot(adj, hw.astype(jnp.bfloat16), preferred_element_type=jnp.float32)
    h = jnp.maximum(h, 0.0)

    # m2: adj @ (h @ W2)   (no activation)
    hw = jnp.dot(h, w2_ref[...], preferred_element_type=jnp.float32)
    o_ref[...] = jnp.dot(adj, hw.astype(jnp.bfloat16),
                         preferred_element_type=jnp.float32)


def _fused_forward(adj_bf, xw1_bf, w3_p, w2_p):
    N = adj_bf.shape[0]
    hid_p = w3_p.shape[0]
    cls_p = w2_p.shape[1]

    # Single-buffered resident operands + a few (N, 128) fp32 temporaries + headroom.
    vmem_bytes = (adj_bf.size * 2 + xw1_bf.size * 2
                  + (w3_p.size + w2_p.size) * 4
                  + 8 * N * max(hid_p, cls_p) * 4 + (4 << 20))
    vmem_bytes = int(min(max(vmem_bytes, 16 << 20), _VMEM_LIMIT_CAP))

    def call(single_buffer):
        def spec(shape):
            kw = {"pipeline_mode": pl.Buffered(1)} if single_buffer else {}
            return pl.BlockSpec(shape, lambda i: (0, 0), **kw)

        out = pl.pallas_call(
            _gnnp_fused_kernel,
            out_shape=jax.ShapeDtypeStruct((N, cls_p), jnp.float32),
            grid=(1,),
            in_specs=[
                spec((N, N)),            # adj (resident, bf16)
                spec((N, hid_p)),        # x @ W1 (bf16)
                spec((hid_p, hid_p)),    # W3
                spec((hid_p, cls_p)),    # W2
            ],
            out_specs=spec((N, cls_p)),
            compiler_params=pltpu.CompilerParams(
                dimension_semantics=("arbitrary",),
                vmem_limit_bytes=vmem_bytes),
        )(adj_bf, xw1_bf, w3_p, w2_p)
        return jax.block_until_ready(out)

    try:
        # grid=(1,): double buffering is pure VMEM waste -> single-buffer everything.
        return call(single_buffer=True)
    except Exception:
        # pl.Buffered(1) not accepted by this runtime: keep default buffering
        # (correct, just a larger VMEM footprint).
        return call(single_buffer=False)


# ----------------------------------------------------------------------------
# Path 2: row-tiled per-layer kernel (large N; parallel axis for v7x megacore)
# ----------------------------------------------------------------------------
def _gcn_rowtile_kernel(adj_ref, hw_ref, o_ref, *, relu):
    # o[rows, :] = act(adj[rows, :] @ (h @ W)); h @ W is precomputed (tiny).
    acc = jnp.dot(adj_ref[...], hw_ref[...], preferred_element_type=jnp.float32)
    if relu:
        acc = jnp.maximum(acc, 0.0)
    o_ref[...] = acc


def _rowtile_layer(adj_bf, hw_bf, relu, tm):
    N = adj_bf.shape[0]
    f_p = hw_bf.shape[1]
    # Double-buffered adj slabs + resident hw + output tiles + headroom.
    vmem_bytes = 2 * tm * N * 2 + N * f_p * 2 + 2 * tm * f_p * 4 + (4 << 20)
    vmem_bytes = int(min(max(vmem_bytes, 16 << 20), _VMEM_LIMIT_CAP))

    return pl.pallas_call(
        functools.partial(_gcn_rowtile_kernel, relu=relu),
        out_shape=jax.ShapeDtypeStruct((N, f_p), jnp.float32),
        grid=(N // tm,),
        in_specs=[
            pl.BlockSpec((tm, N), lambda i: (i, 0)),   # adj row slab (streams)
            pl.BlockSpec((N, f_p), lambda i: (0, 0)),  # h @ W (resident)
        ],
        out_specs=pl.BlockSpec((tm, f_p), lambda i: (i, 0)),
        compiler_params=pltpu.CompilerParams(
            dimension_semantics=("parallel",),
            vmem_limit_bytes=vmem_bytes),
    )(adj_bf, hw_bf)


def _tiled_forward(adj_bf, x_p, w1_p, w3_p, w2_p, tm):
    h = x_p
    for w, relu in ((w1_p, True), (w3_p, True), (w2_p, False)):
        hw = jnp.dot(h, w).astype(jnp.bfloat16)       # trivial XLA matmul
        h = _rowtile_layer(adj_bf, hw, relu, tm)
    return h


# ----------------------------------------------------------------------------
# Public forward
# ----------------------------------------------------------------------------
def gnnp_forward(x, adj, w1, w3, w2, *, force_tiled=False, tm=None):
    """GNNp.forward (eval mode) on TPU."""
    N, fin = x.shape
    hidden = w1.shape[1]
    num_class = w2.shape[1]
    assert adj.shape == (N, N)
    assert N % SUBLANE == 0, "node count must be a multiple of the sublane width (8)"

    fin_p = _round_up(fin, LANE)
    hid_p = _round_up(hidden, LANE)
    cls_p = _round_up(num_class, LANE)

    adj_bf = adj.astype(jnp.bfloat16)
    w1_p = _pad_to(w1.astype(jnp.float32), (fin_p, hid_p))
    w3_p = _pad_to(w3.astype(jnp.float32), (hid_p, hid_p))
    w2_p = _pad_to(w2.astype(jnp.float32), (hid_p, cls_p))

    # Estimated single-buffered fused-path footprint (bf16 adj dominates).
    fused_bytes = (2 * N * N + 2 * N * hid_p
                   + 4 * (hid_p * hid_p + hid_p * cls_p)
                   + 8 * N * max(hid_p, cls_p) * 4 + (4 << 20))

    if not force_tiled and fused_bytes <= _FAST_PATH_VMEM_BUDGET:
        # Precompute x@W1 at its true (N, fin) x (fin, hidden) size (no padded-zero
        # MXU work), then pad/cast for the lane-dense kernel.
        xw1 = jnp.dot(x.astype(jnp.float32), w1.astype(jnp.float32))
        xw1_bf = _pad_to(xw1, (N, hid_p)).astype(jnp.bfloat16)
        out = _fused_forward(adj_bf, xw1_bf, w3_p, w2_p)
    else:
        if tm is None:
            tm = next(t for t in (1024, 512, 256, 128, 64, 32, 16, 8) if N % t == 0)
        assert N % tm == 0 and tm % SUBLANE == 0
        x_p = _pad_to(x.astype(jnp.float32), (N, fin_p))
        out = _tiled_forward(adj_bf, x_p, w1_p, w3_p, w2_p, tm)

    return out[:, :num_class]


# ----------------------------------------------------------------------------
# Parameter / input construction (matches GraphConvolution.reset_parameters)
# ----------------------------------------------------------------------------
def init_gc_weight(key, fin, fout):
    stdv = 1.0 / math.sqrt(fout)
    return jax.random.uniform(key, (fin, fout), jnp.float32, -stdv, stdv)


def make_adj(key, n):
    # dense symmetric random graph with self loops, row-normalized
    a = (jax.random.uniform(key, (n, n)) < 0.05).astype(jnp.float32)
    a = jnp.maximum(a, a.T)
    a = a + jnp.eye(n, dtype=jnp.float32)
    deg = jnp.sum(a, axis=1, keepdims=True)
    return a / deg


if __name__ == "__main__":
    N = 256            # number of nodes
    num_class = 8      # opt['num_class']
    hidden_dim = 32    # opt['hidden_dim']

    key = jax.random.PRNGKey(0)
    k_adj, k_x, k_w1, k_w3, k_w2 = jax.random.split(key, 5)

    adj = make_adj(k_adj, N)
    # GNNp input is a per-node class distribution (N, num_class)
    x = jax.nn.softmax(jax.random.normal(k_x, (N, num_class)), axis=-1)

    w1 = init_gc_weight(k_w1, num_class, hidden_dim)   # m1
    w3 = init_gc_weight(k_w3, hidden_dim, hidden_dim)  # m3
    w2 = init_gc_weight(k_w2, hidden_dim, num_class)   # m2

    # Fused fast path (adj resident in VMEM).
    out_fused = gnnp_forward(x, adj, w1, w3, w2)
    jax.block_until_ready(out_fused)

    # Row-tiled large-N path, forced with a small tile so the grid has 4 steps.
    out_tiled = gnnp_forward(x, adj, w1, w3, w2, force_tiled=True, tm=64)
    jax.block_until_ready(out_tiled)

    # Plain-JAX fp32 reference.
    ref = jnp.maximum(adj @ (x @ w1), 0.0)
    ref = jnp.maximum(adj @ (ref @ w3), 0.0)
    ref = adj @ (ref @ w2)

    assert out_fused.shape == (N, num_class)
    assert out_tiled.shape == (N, num_class)
    # bf16 adj/h with fp32 accumulation: error vs fp32 reference is ~1e-3.
    assert jnp.allclose(out_fused, ref, atol=1e-2, rtol=1e-2), (
        float(jnp.max(jnp.abs(out_fused - ref))))
    assert jnp.allclose(out_tiled, ref, atol=1e-2, rtol=1e-2), (
        float(jnp.max(jnp.abs(out_tiled - ref))))

    print("KERNEL_OK")
</pallas_src>

<mosaic_0001>
module attributes {stable_mosaic.version = 11 : i64} {
  func.func @_gnnp_fused_kernel(%arg0: i32, %arg1: memref<256x256xbf16, #tpu.memory_space<vmem>>, %arg2: memref<256x128xbf16, #tpu.memory_space<vmem>>, %arg3: memref<128x128xf32, #tpu.memory_space<vmem>>, %arg4: memref<128x128xf32, #tpu.memory_space<vmem>>, %arg5: memref<256x128xf32, #tpu.memory_space<vmem>>) attributes {dimension_semantics = [#tpu.dimension_semantics<arbitrary>], iteration_bounds = array<i64: 1>, scalar_prefetch = 0 : i64, scratch_operands = 0 : i64, tpu.core_type = #tpu.core_type<tc>, window_params = [{pipeline_mode = #tpu.pipeline_mode<synchronous>, transform_indices = @transform_0, window_bounds = array<i64: 256, 256>}, {pipeline_mode = #tpu.pipeline_mode<synchronous>, transform_indices = @transform_1, window_bounds = array<i64: 256, 128>}, {pipeline_mode = #tpu.pipeline_mode<synchronous>, transform_indices = @transform_2, window_bounds = array<i64: 128, 128>}, {pipeline_mode = #tpu.pipeline_mode<synchronous>, transform_indices = @transform_3, window_bounds = array<i64: 128, 128>}, {pipeline_mode = #tpu.pipeline_mode<synchronous>, transform_indices = @transform_4, window_bounds = array<i64: 256, 128>}]} {
    %c0 = arith.constant 0 : index
    %c0_0 = arith.constant 0 : index
    %0 = vector.load %arg1[%c0, %c0_0] : memref<256x256xbf16, #tpu.memory_space<vmem>>, vector<256x256xbf16>
    %c0_1 = arith.constant 0 : index
    %c0_2 = arith.constant 0 : index
    %1 = vector.load %arg2[%c0_1, %c0_2] : memref<256x128xbf16, #tpu.memory_space<vmem>>, vector<256x128xbf16>
    %cst = arith.constant dense<0.000000e+00> : vector<256x128xf32>
    %2 = tpu.matmul %0, %1, %cst {dimension_numbers = #tpu.dot_dimension_numbers<[1], [0], [0], [1], [0, 0, 1, 1], [], []>} : vector<256x256xbf16>, vector<256x128xbf16>, vector<256x128xf32> -> vector<256x128xf32>
    %cst_3 = arith.constant 0.000000e+00 : f32
    %3 = vector.broadcast %cst_3 : f32 to vector<256x128xf32>
    %4 = arith.maximumf %2, %3 : vector<256x128xf32>
    %c0_4 = arith.constant 0 : index
    %c0_5 = arith.constant 0 : index
    %5 = vector.load %arg3[%c0_4, %c0_5] : memref<128x128xf32, #tpu.memory_space<vmem>>, vector<128x128xf32>
    %cst_6 = arith.constant dense<0.000000e+00> : vector<256x128xf32>
    %6 = tpu.matmul %4, %5, %cst_6 {dimension_numbers = #tpu.dot_dimension_numbers<[1], [0], [0], [1], [0, 0, 1, 1], [], []>} : vector<256x128xf32>, vector<128x128xf32>, vector<256x128xf32> -> vector<256x128xf32>
    %7 = arith.truncf %6 : vector<256x128xf32> to vector<256x128xbf16>
    %cst_7 = arith.constant dense<0.000000e+00> : vector<256x128xf32>
    %8 = tpu.matmul %0, %7, %cst_7 {dimension_numbers = #tpu.dot_dimension_numbers<[1], [0], [0], [1], [0, 0, 1, 1], [], []>} : vector<256x256xbf16>, vector<256x128xbf16>, vector<256x128xf32> -> vector<256x128xf32>
    %cst_8 = arith.constant 0.000000e+00 : f32
    %9 = vector.broadcast %cst_8 : f32 to vector<256x128xf32>
    %10 = arith.maximumf %8, %9 : vector<256x128xf32>
    %c0_9 = arith.constant 0 : index
    %c0_10 = arith.constant 0 : index
    %11 = vector.load %arg4[%c0_9, %c0_10] : memref<128x128xf32, #tpu.memory_space<vmem>>, vector<128x128xf32>
    %cst_11 = arith.constant dense<0.000000e+00> : vector<256x128xf32>
    %12 = tpu.matmul %10, %11, %cst_11 {dimension_numbers = #tpu.dot_dimension_numbers<[1], [0], [0], [1], [0, 0, 1, 1], [], []>} : vector<256x128xf32>, vector<128x128xf32>, vector<256x128xf32> -> vector<256x128xf32>
    %13 = arith.truncf %12 : vector<256x128xf32> to vector<256x128xbf16>
    %cst_12 = arith.constant dense<0.000000e+00> : vector<256x128xf32>
    %14 = tpu.matmul %0, %13, %cst_12 {dimension_numbers = #tpu.dot_dimension_numbers<[1], [0], [0], [1], [0, 0, 1, 1], [], []>} : vector<256x256xbf16>, vector<256x128xbf16>, vector<256x128xf32> -> vector<256x128xf32>
    %c0_13 = arith.constant 0 : index
    %c0_14 = arith.constant 0 : index
    %15 = vector.load %arg5[%c0_13, %c0_14] : memref<256x128xf32, #tpu.memory_space<vmem>>, vector<256x128xf32>
    tpu.vector_store %arg5[%c0_13, %c0_14], %14 {strides = array<i32>} : memref<256x128xf32, #tpu.memory_space<vmem>>, vector<256x128xf32>,
    return
  }
  func.func @transform_0(%arg0: i32) -> (i32, i32) {
    %c0_i32 = arith.constant 0 : i32
    %c0_i32_0 = arith.constant 0 : i32
    %c0_i32_1 = arith.constant 0 : i32
    return %c0_i32, %c0_i32_0 : i32, i32
  }
  func.func @transform_1(%arg0: i32) -> (i32, i32) {
    %c0_i32 = arith.constant 0 : i32
    %c0_i32_0 = arith.constant 0 : i32
    %c0_i32_1 = arith.constant 0 : i32
    return %c0_i32, %c0_i32_0 : i32, i32
  }
  func.func @transform_2(%arg0: i32) -> (i32, i32) {
    %c0_i32 = arith.constant 0 : i32
    %c0_i32_0 = arith.constant 0 : i32
    %c0_i32_1 = arith.constant 0 : i32
    return %c0_i32, %c0_i32_0 : i32, i32
  }
  func.func @transform_3(%arg0: i32) -> (i32, i32) {
    %c0_i32 = arith.constant 0 : i32
    %c0_i32_0 = arith.constant 0 : i32
    %c0_i32_1 = arith.constant 0 : i32
    return %c0_i32, %c0_i32_0 : i32, i32
  }
  func.func @transform_4(%arg0: i32) -> (i32, i32) {
    %c0_i32 = arith.constant 0 : i32
    %c0_i32_0 = arith.constant 0 : i32
    %c0_i32_1 = arith.constant 0 : i32
    return %c0_i32, %c0_i32_0 : i32, i32
  }
}

module attributes {stable_mosaic.version = 11 : i64} {
  func.func @_gnnp_fused_kernel(%arg0: i32, %arg1: memref<256x256xbf16, #tpu.memory_space<vmem>>, %arg2: memref<256x128xbf16, #tpu.memory_space<vmem>>, %arg3: memref<128x128xf32, #tpu.memory_space<vmem>>, %arg4: memref<128x128xf32, #tpu.memory_space<vmem>>, %arg5: memref<256x128xf32, #tpu.memory_space<vmem>>) attributes {dimension_semantics = [#tpu.dimension_semantics<arbitrary>], iteration_bounds = array<i64: 1>, scalar_prefetch = 0 : i64, scratch_operands = 0 : i64, tpu.core_type = #tpu.core_type<tc>, window_params = [{pipeline_mode = #tpu.pipeline_mode<synchronous>, transform_indices = @transform_0, window_bounds = array<i64: 256, 256>}, {pipeline_mode = #tpu.pipeline_mode<synchronous>, transform_indices = @transform_1, window_bounds = array<i64: 256, 128>}, {pipeline_mode = #tpu.pipeline_mode<synchronous>, transform_indices = @transform_2, window_bounds = array<i64: 128, 128>}, {pipeline_mode = #tpu.pipeline_mode<synchronous>, transform_indices = @transform_3, window_bounds = array<i64: 128, 128>}, {pipeline_mode = #tpu.pipeline_mode<synchronous>, transform_indices = @transform_4, window_bounds = array<i64: 256, 128>}]} {
    %c0 = arith.constant 0 : index
    %c0_0 = arith.constant 0 : index
    %0 = vector.load %arg1[%c0, %c0_0] : memref<256x256xbf16, #tpu.memory_space<vmem>>, vector<256x256xbf16>
    %c0_1 = arith.constant 0 : index
    %c0_2 = arith.constant 0 : index
    %1 = vector.load %arg2[%c0_1, %c0_2] : memref<256x128xbf16, #tpu.memory_space<vmem>>, vector<256x128xbf16>
    %cst = arith.constant dense<0.000000e+00> : vector<256x128xf32>
    %2 = tpu.matmul %0, %1, %cst {dimension_numbers = #tpu.dot_dimension_numbers<[1], [0], [0], [1], [0, 0, 1, 1], [], []>} : vector<256x256xbf16>, vector<256x128xbf16>, vector<256x128xf32> -> vector<256x128xf32>
    %cst_3 = arith.constant 0.000000e+00 : f32
    %3 = vector.broadcast %cst_3 : f32 to vector<256x128xf32>
    %4 = arith.maximumf %2, %3 : vector<256x128xf32>
    %c0_4 = arith.constant 0 : index
    %c0_5 = arith.constant 0 : index
    %5 = vector.load %arg3[%c0_4, %c0_5] : memref<128x128xf32, #tpu.memory_space<vmem>>, vector<128x128xf32>
    %cst_6 = arith.constant dense<0.000000e+00> : vector<256x128xf32>
    %6 = tpu.matmul %4, %5, %cst_6 {dimension_numbers = #tpu.dot_dimension_numbers<[1], [0], [0], [1], [0, 0, 1, 1], [], []>} : vector<256x128xf32>, vector<128x128xf32>, vector<256x128xf32> -> vector<256x128xf32>
    %7 = arith.truncf %6 : vector<256x128xf32> to vector<256x128xbf16>
    %cst_7 = arith.constant dense<0.000000e+00> : vector<256x128xf32>
    %8 = tpu.matmul %0, %7, %cst_7 {dimension_numbers = #tpu.dot_dimension_numbers<[1], [0], [0], [1], [0, 0, 1, 1], [], []>} : vector<256x256xbf16>, vector<256x128xbf16>, vector<256x128xf32> -> vector<256x128xf32>
    %cst_8 = arith.constant 0.000000e+00 : f32
    %9 = vector.broadcast %cst_8 : f32 to vector<256x128xf32>
    %10 = arith.maximumf %8, %9 : vector<256x128xf32>
    %c0_9 = arith.constant 0 : index
    %c0_10 = arith.constant 0 : index
    %11 = vector.load %arg4[%c0_9, %c0_10] : memref<128x128xf32, #tpu.memory_space<vmem>>, vector<128x128xf32>
    %cst_11 = arith.constant dense<0.000000e+00> : vector<256x128xf32>
    %12 = tpu.matmul %10, %11, %cst_11 {dimension_numbers = #tpu.dot_dimension_numbers<[1], [0], [0], [1], [0, 0, 1, 1], [], []>} : vector<256x128xf32>, vector<128x128xf32>, vector<256x128xf32> -> vector<256x128xf32>
    %13 = arith.truncf %12 : vector<256x128xf32> to vector<256x128xbf16>
    %cst_12 = arith.constant dense<0.000000e+00> : vector<256x128xf32>
    %14 = tpu.matmul %0, %13, %cst_12 {dimension_numbers = #tpu.dot_dimension_numbers<[1], [0], [0], [1], [0, 0, 1, 1], [], []>} : vector<256x256xbf16>, vector<256x128xbf16>, vector<256x128xf32> -> vector<256x128xf32>
    %c0_13 = arith.constant 0 : index
    %c0_14 = arith.constant 0 : index
    %15 = vector.load %arg5[%c0_13, %c0_14] : memref<256x128xf32, #tpu.memory_space<vmem>>, vector<256x128xf32>
    tpu.vector_store %arg5[%c0_13, %c0_14], %14 {strides = array<i32>} : memref<256x128xf32, #tpu.memory_space<vmem>>, vector<256x128xf32>,
    return
  }
  func.func @transform_0(%arg0: i32) -> (i32, i32) {
    %c0_i32 = arith.constant 0 : i32
    %c0_i32_0 = arith.constant 0 : i32
    %c0_i32_1 = arith.constant 0 : i32
    return %c0_i32, %c0_i32_0 : i32, i32
  }
  func.func @transform_1(%arg0: i32) -> (i32, i32) {
    %c0_i32 = arith.constant 0 : i32
    %c0_i32_0 = arith.constant 0 : i32
    %c0_i32_1 = arith.constant 0 : i32
    return %c0_i32, %c0_i32_0 : i32, i32
  }
  func.func @transform_2(%arg0: i32) -> (i32, i32) {
    %c0_i32 = arith.constant 0 : i32
    %c0_i32_0 = arith.constant 0 : i32
    %c0_i32_1 = arith.constant 0 : i32
    return %c0_i32, %c0_i32_0 : i32, i32
  }
  func.func @transform_3(%arg0: i32) -> (i32, i32) {
    %c0_i32 = arith.constant 0 : i32
    %c0_i32_0 = arith.constant 0 : i32
    %c0_i32_1 = arith.constant 0 : i32
    return %c0_i32, %c0_i32_0 : i32, i32
  }
  func.func @transform_4(%arg0: i32) -> (i32, i32) {
    %c0_i32 = arith.constant 0 : i32
    %c0_i32_0 = arith.constant 0 : i32
    %c0_i32_1 = arith.constant 0 : i32
    return %c0_i32, %c0_i32_0 : i32, i32
  }
}

</mosaic_0001>

<bundles_post_ra>
// kernel: tpu_custom_call.1
= control target key start
LH: loop header
LB: loop body
LE: loop exit
PB: predicated region body
PF: predicated region fallthrough
CT: control target
= control target key end

     0   :  { %9 = vsyncpa [#allocation3], 0  ;;  %s1991_s0 = inlined_call_operand.hbm [shape: bf16[256,256], index: 0, kind: input, shape index: {}]   ;;  %s1992_s1 = inlined_call_operand.hbm [shape: bf16[256,128], index: 1, kind: input, shape index: {}]   ;;  %s1993_s2 = inlined_call_operand.hbm [shape: f32[128,128], index: 2, kind: input, shape index: {}]   ;;  %s1994_s3 = inlined_call_operand.hbm [shape: f32[128,128], index: 3, kind: input, shape index: {}]   ;;  %s1995_s4 = inlined_call_operand.hbm [shape: f32[256,128], index: 4, kind: output, shape index: {}]  }
   0x1   :  { %10 = vsyncpa [#allocation6], 0 }
   0x2   :  { %11 = vsyncpa [#allocation9], 0  ;;  %s30_s17 = sshll.u32 %s1992_s1, 4  ;;  %s31_s17 = int_to_ptr.hbm [resolvable:$true] %s30_s17 }
   0x3   :  { %12 = vsyncpa [#allocation4], 0  ;;  %s1719_s18 = smov [#allocation5]   ;;  %s17_s22 = sshll.u32 %s1991_s0, 4  ;;  %s18_s22 = int_to_ptr.hbm [resolvable:$true] %s17_s22 }
   0x4   :  { %s32_s19 = sshll.u32 %s1719_s18, 4  ;;  %s1720_s23 = smov 64   ;;  %s33_s19 = int_to_ptr.vmem [resolvable:$true] %s32_s19 }
   0x5   :  { %s1721_s24 = smov 4   ;;  %s1722_s25 = smov [#allocation2]  }
   0x6   :  { %38 = dma.hbm_to_vmem [thread:$0]  %s31_s17, 2048, %s33_s19, [#allocation6], %s1720_s23, %s1720_s23, %s1721_s24  }
   0x7   :  { %s19_s26 = sshll.u32 %s1722_s25, 4  ;;  %s1723_s27 = smov 128   ;;  %s20_s26 = int_to_ptr.vmem [resolvable:$true] %s19_s26 }
   0x8   :  { %s1724_s28 = smov 8   ;;  %s43_s30 = sshll.u32 %s1993_s2, 4  ;;  %s44_s30 = int_to_ptr.hbm [resolvable:$true] %s43_s30 }
   0x9   :  { %25 = dma.hbm_to_vmem [thread:$0]  %s18_s22, 4096, %s20_s26, [#allocation3], %s1723_s27, %s1723_s27, %s1724_s28  }
   0xa   :  { %s1725_s5 = smov [#allocation7]   ;;  %s56_s8 = sshll.u32 %s1994_s3, 4  ;;  %s57_s8 = int_to_ptr.hbm [resolvable:$true] %s56_s8 }
   0xb   :  { %s45_s0 = sshll.u32 %s1725_s5, 4  ;;  %s1726_s9 = smov [#allocation8]   ;;  %s46_s0 = int_to_ptr.vmem [resolvable:$true] %s45_s0 }
   0xc   :  { %51 = dma.hbm_to_vmem [thread:$0]  %s44_s30, 2048, %s46_s0, [#allocation6], %s1723_s27, %s1723_s27, %s1724_s28  }
   0xd   :  { %s58_s10 = sshll.u32 %s1726_s9, 4  ;;  %s59_s10 = int_to_ptr.vmem [resolvable:$true] %s58_s10 }
   0xe   :  { %64 = dma.hbm_to_vmem [thread:$0]  %s57_s8, 2048, %s59_s10, [#allocation9], %s1723_s27, %s1723_s27, %s1724_s28  }
   0xf   :  { %1711 = dma.done.wait [#allocation3], 4096  }
  0x10   :  { %1712 = vsyncadd [#allocation3], 4294963200 }
  0x11   :  { %1713 = dma.done.wait [#allocation6], 4096  }
  0x12   :  { %1714 = vsyncadd [#allocation6], 4294963200 }
  0x13   :  { %1715 = dma.done.wait [#allocation9], 2048  }
  0x14   :  { %1716 = vsyncadd [#allocation9], 4294965248  ;;  %v1573_v0 = vld [vmem:[#allocation5 + $0x38] sm:$0xff]  ;;  %v1572_v2 = vld [vmem:[#allocation5 + $0x30] sm:$0xff]  ;;  %s1727_s2 = smov [#allocation10]   ;;  %s1327_s13 = sshll.u32 %s1995_s4, 4  ;;  %s1328_s13 = int_to_ptr.hbm [resolvable:$true] %s1327_s13 }
  0x15   :  { %v1581_v1 = vld [vmem:[#allocation5 + $0x78] sm:$0xff]  ;;  %401 = vmatpush.bf16.msra.mxu0 %v1573_v0  ;;  %v1580_v3 = vld [vmem:[#allocation5 + $0x70] sm:$0xff]  ;;  %v1571_v4 = vld [vmem:[#allocation5 + $0x28] sm:$0xff]  ;;  %s1325_s3 = sshll.u32 %s1727_s2, 4  ;;  %s1326_s3 = int_to_ptr.vmem [resolvable:$true] %s1325_s3 }
  0x16   :  { %490 = vmatpush.bf16.msra.mxu1 %v1581_v1  ;;  %v1579_v5 = vld [vmem:[#allocation5 + $0x68] sm:$0xff]  ;;  %v1570_v6 = vld [vmem:[#allocation5 + $0x20] sm:$0xff]  ;;  %v1569_v8 = vld [vmem:[#allocation5 + $0x18] sm:$0xff] }
  0x17   :  { %v1578_v7 = vld [vmem:[#allocation5 + $0x60] sm:$0xff]  ;;  %v1577_v9 = vld [vmem:[#allocation5 + $0x58] sm:$0xff]  ;;  %v1568_v10 = vld [vmem:[#allocation5 + $0x10] sm:$0xff] }
  0x18   :  { %v1576_v11 = vld [vmem:[#allocation5 + $0x50] sm:$0xff]  ;;  %v1567_v12 = vld [vmem:[#allocation5 + $0x8] sm:$0xff]  ;;  %v1566_v14 = vld [vmem:[#allocation5] sm:$0xff] }
  0x19   :  { %402 = vmatpush.bf16.msra.mxu0 %v1572_v2  ;;  %v1575_v13 = vld [vmem:[#allocation5 + $0x48] sm:$0xff]  ;;  %v1574_v15 = vld [vmem:[#allocation5 + $0x40] sm:$0xff]  ;;  %v1352_v22 = vld [vmem:[#allocation2 + $0x10] sm:$0xf] }
  0x1a   :  { %491 = vmatpush.bf16.msra.mxu1 %v1580_v3  ;;  %v1344_v16 = vld [vmem:[#allocation2] sm:$0xf]  ;;  %v1535_v17 = vld [vmem:[#allocation2 + $0x4] sm:$0xf0]  ;;  %v1534_v18 = vld [vmem:[#allocation2 + $0x4] sm:$0xf] }
  0x1b   :  { %v1346_v19 = vld [vmem:[#allocation2 + $0x8] sm:$0xf0]  ;;  %v1774_v20 = vor.u32 %v1535_v17, %v1344_v16  ;;  %v1537_v23 = vld [vmem:[#allocation2 + $0x14] sm:$0xf0]  ;;  %v1536_v24 = vld [vmem:[#allocation2 + $0x14] sm:$0xf] }
  0x1c   :  { %v1776_v21 = vor.u32 %v1534_v18, %v1346_v19  ;;  %v1354_v25 = vld [vmem:[#allocation2 + $0x18] sm:$0xf0]  ;;  %v1780_v26 = vor.u32 %v1537_v23, %v1352_v22  ;;  %v1360_v28 = vld [vmem:[#allocation2 + $0x20] sm:$0xf]  ;;  %v1539_v29 = vld [vmem:[#allocation2 + $0x24] sm:$0xf0] }
  0x1d   :  { %403 = vmatpush.bf16.msra.mxu0 %v1571_v4  ;;  %v1782_v27 = vor.u32 %v1536_v24, %v1354_v25  ;;  %v1538_v30 = vld [vmem:[#allocation2 + $0x24] sm:$0xf]  ;;  %v1362_v31 = vld [vmem:[#allocation2 + $0x28] sm:$0xf0]  ;;  %v1786_v32 = vor.u32 %v1539_v29, %v1360_v28  ;;  %v1368_v34 = vld [vmem:[#allocation2 + $0x30] sm:$0xf] }
  0x1e   :  { %492 = vmatpush.bf16.msra.mxu1 %v1579_v5  ;;  %v1788_v33 = vor.u32 %v1538_v30, %v1362_v31  ;;  %v1541_v35 = vld [vmem:[#allocation2 + $0x34] sm:$0xf0]  ;;  %v1540_v36 = vld [vmem:[#allocation2 + $0x34] sm:$0xf]  ;;  %v1370_v37 = vld [vmem:[#allocation2 + $0x38] sm:$0xf0] }
  0x1f   :  { %v1792_v38 = vor.u32 %v1541_v35, %v1368_v34  ;;  %v1794_v39 = vor.u32 %v1540_v36, %v1370_v37  ;;  %v1376_v40 = vld [vmem:[#allocation2 + $0x40] sm:$0xf]  ;;  %v1543_v41 = vld [vmem:[#allocation2 + $0x44] sm:$0xf0]  ;;  %v1542_v42 = vld [vmem:[#allocation2 + $0x44] sm:$0xf] }
  0x20   :  { %v1378_v43 = vld [vmem:[#allocation2 + $0x48] sm:$0xf0]  ;;  %v1798_v44 = vor.u32 %v1543_v41, %v1376_v40  ;;  %v626_v46 = vld [vmem:[#allocation7 + $0x78] sm:$0xff]  ;;  %v625_v47 = vld [vmem:[#allocation7 + $0x70] sm:$0xff] }
  0x21   :  { %404 = vmatpush.bf16.msra.mxu0 %v1570_v6  ;;  %v1800_v45 = vor.u32 %v1542_v42, %v1378_v43  ;;  %627 = vmatpush.msra.mxu2 %v626_v46  ;;  %v624_v48 = vld [vmem:[#allocation7 + $0x68] sm:$0xff]  ;;  %v623_v49 = vld [vmem:[#allocation7 + $0x60] sm:$0xff]  ;;  %v622_v50 = vld [vmem:[#allocation7 + $0x58] sm:$0xff] }
  0x22   :  { %493 = vmatpush.bf16.msra.mxu1 %v1578_v7  ;;  %v1384_v51 = vld [vmem:[#allocation2 + $0x50] sm:$0xf]  ;;  %v1545_v53 = vld [vmem:[#allocation2 + $0x54] sm:$0xf0]  ;;  %v1544_v54 = vld [vmem:[#allocation2 + $0x54] sm:$0xf] }
  0x23   :  { %628 = vmatpush.msra.mxu2 %v625_v47  ;;  %v621_v52 = vld [vmem:[#allocation7 + $0x50] sm:$0xff]  ;;  %v1386_v55 = vld [vmem:[#allocation2 + $0x58] sm:$0xf0]  ;;  %v620_v56 = vld [vmem:[#allocation7 + $0x48] sm:$0xff]  ;;  %v1804_v57 = vor.u32 %v1545_v53, %v1384_v51 }
  0x24   :  { %v1806_v58 = vor.u32 %v1544_v54, %v1386_v55  ;;  %v619_v59 = vld [vmem:[#allocation7 + $0x40] sm:$0xff]  ;;  %v618_v60 = vld [vmem:[#allocation7 + $0x38] sm:$0xff]  ;;  %v617_v61 = vld [vmem:[#allocation7 + $0x30] sm:$0xff] }
  0x25   :  { %405 = vmatpush.bf16.msra.mxu0 %v1569_v8  ;;  %629 = vmatpush.msra.mxu2 %v624_v48  ;;  %v616_v62 = vld [vmem:[#allocation7 + $0x28] sm:$0xff]  ;;  %v615_v63 = vld [vmem:[#allocation7 + $0x20] sm:$0xff]  ;;  %v614_v1 = vld [vmem:[#allocation7 + $0x18] sm:$0xff] }
  0x26   :  { %494 = vmatpush.bf16.msra.mxu1 %v1577_v9  ;;  %v1392_v0 = vld [vmem:[#allocation2 + $0x60] sm:$0xf]  ;;  %v1547_v2 = vld [vmem:[#allocation2 + $0x64] sm:$0xf0]  ;;  %v1546_v3 = vld [vmem:[#allocation2 + $0x64] sm:$0xf] }
  0x27   :  { %630 = vmatpush.msra.mxu2 %v623_v49  ;;  %v1394_v4 = vld [vmem:[#allocation2 + $0x68] sm:$0xf0]  ;;  %v1810_v5 = vor.u32 %v1547_v2, %v1392_v0  ;;  %v613_v7 = vld [vmem:[#allocation7 + $0x10] sm:$0xff]  ;;  %v611_v9 = vld [vmem:[#allocation7] sm:$0xff] }
  0x28   :  { %v1812_v6 = vor.u32 %v1546_v3, %v1394_v4  ;;  %v612_v8 = vld [vmem:[#allocation7 + $0x8] sm:$0xff]  ;;  %v1408_v16 = vld [vmem:[#allocation2 + $0x80] sm:$0xf]  ;;  %v1550_v18 = vld [vmem:[#allocation2 + $0x84] sm:$0xf] }
  0x29   :  { %406 = vmatpush.bf16.msra.mxu0 %v1568_v10  ;;  %631 = vmatpush.msra.mxu2 %v622_v50  ;;  %v1400_v10 = vld [vmem:[#allocation2 + $0x70] sm:$0xf]  ;;  %v1551_v17 = vld [vmem:[#allocation2 + $0x84] sm:$0xf0]  ;;  %v1410_v19 = vld [vmem:[#allocation2 + $0x88] sm:$0xf0] }
  0x2a   :  { %495 = vmatpush.bf16.msra.mxu1 %v1576_v11  ;;  %v1549_v11 = vld [vmem:[#allocation2 + $0x74] sm:$0xf0]  ;;  %v1822_v22 = vor.u32 %v1551_v17, %v1408_v16  ;;  %v1824_v23 = vor.u32 %v1550_v18, %v1410_v19  ;;  %v1416_v36 = vld [vmem:[#allocation2 + $0x90] sm:$0xf]  ;;  %v1552_v40 = vld [vmem:[#allocation2 + $0x94] sm:$0xf] }
  0x2b   :  { %632 = vmatpush.msra.mxu2 %v621_v52  ;;  %v1553_v37 = vld [vmem:[#allocation2 + $0x94] sm:$0xf0]  ;;  %v1418_v41 = vld [vmem:[#allocation2 + $0x98] sm:$0xf0]  ;;  %v1424_v54 = vld [vmem:[#allocation2 + $0xa0] sm:$0xf] }
  0x2c   :  { %v1828_v42 = vor.u32 %v1553_v37, %v1416_v36  ;;  %v1830_v43 = vor.u32 %v1552_v40, %v1418_v41  ;;  %v1555_v55 = vld [vmem:[#allocation2 + $0xa4] sm:$0xf0] }
  0x2d   :  { %407 = vmatpush.bf16.msra.mxu0 %v1567_v12  ;;  %633 = vmatpush.msra.mxu2 %v620_v56  ;;  %v1548_v12 = vld [vmem:[#allocation2 + $0x74] sm:$0xf]  ;;  %v1554_v56 = vld [vmem:[#allocation2 + $0xa4] sm:$0xf] }
  0x2e   :  { %496 = vmatpush.bf16.msra.mxu1 %v1575_v13  ;;  %v1402_v13 = vld [vmem:[#allocation2 + $0x78] sm:$0xf0] }
  0x2f   :  { %634 = vmatpush.msra.mxu2 %v619_v59  ;;  %v1426_v59 = vld [vmem:[#allocation2 + $0xa8] sm:$0xf0] }
  0x31   :  { %408 = vmatpush.bf16.msra.mxu0 %v1566_v14  ;;  %635 = vmatpush.msra.mxu2 %v618_v60  ;;  %v1816_v14 = vor.u32 %v1549_v11, %v1400_v10  ;;  %v1834_v60 = vor.u32 %v1555_v55, %v1424_v54  ;;  %v1556_v10 = vld [vmem:[#allocation2 + $0xb4] sm:$0xf]  ;;  %v1434_v11 = vld [vmem:[#allocation2 + $0xb8] sm:$0xf0] }
  0x32   :  { %497 = vmatpush.bf16.msra.mxu1 %v1574_v15  ;;  %v1818_v15 = vor.u32 %v1548_v12, %v1402_v13  ;;  %v1842_v13 = vor.u32 %v1556_v10, %v1434_v11  ;;  %v1560_v54 = vld [vmem:[#allocation2 + $0xd4] sm:$0xf]  ;;  %v1450_v55 = vld [vmem:[#allocation2 + $0xd8] sm:$0xf0]  ;;  %v1562_v10 = vld [vmem:[#allocation2 + $0xe4] sm:$0xf] }
  0x33   :  { %636 = vmatpush.msra.mxu2 %v617_v61  ;;  %v1836_v61 = vor.u32 %v1554_v56, %v1426_v59  ;;  %v1854_v59 = vor.u32 %v1560_v54, %v1450_v55  ;;  %v1458_v11 = vld [vmem:[#allocation2 + $0xe8] sm:$0xf0] }
  0x34   :  { %409 = vmatmul.bf16.vlgmr.msra.gmra.mxu0 %v1774_v20 }
  0x35   :  { %498 = vmatmul.bf16.vlgmr.msra.gmra.mxu1 %v1776_v21  ;;  %637 = vmatpush.msra.mxu2 %v616_v62 }
  0x37   :  { %638 = vmatpush.msra.mxu2 %v615_v63 }
  0x39   :  { %639 = vmatpush.msra.mxu2 %v614_v1 }
  0x3b   :  { %640 = vmatpush.msra.mxu2 %v613_v7 }
  0x3d   :  { %641 = vmatpush.msra.mxu2 %v612_v8  ;;  %v1432_v8 = vld [vmem:[#allocation2 + $0xb0] sm:$0xf] }
  0x3f   :  { %642 = vmatpush.msra.mxu2 %v611_v9  ;;  %v1557_v9 = vld [vmem:[#allocation2 + $0xb4] sm:$0xf0] }
  0x40   :  { %v1840_v12 = vor.u32 %v1557_v9, %v1432_v8  ;;  %v1456_v8 = vld [vmem:[#allocation2 + $0xe0] sm:$0xf]  ;;  %v1563_v9 = vld [vmem:[#allocation2 + $0xe4] sm:$0xf0] }
  0x44   :  { %414 = vmatmul.bf16.gmra.mxu0 %v1780_v26 }
  0x45   :  { %503 = vmatmul.bf16.gmra.mxu1 %v1782_v27 }
  0x54   :  { %419 = vmatmul.bf16.gmra.mxu0 %v1786_v32 }
  0x55   :  { %508 = vmatmul.bf16.gmra.mxu1 %v1788_v33 }
  0x64   :  { %424 = vmatmul.bf16.gmra.mxu0 %v1792_v38 }
  0x65   :  { %513 = vmatmul.bf16.gmra.mxu1 %v1794_v39 }
  0x74   :  { %429 = vmatmul.bf16.gmra.mxu0 %v1798_v44 }
  0x75   :  { %518 = vmatmul.bf16.gmra.mxu1 %v1800_v45 }
  0x84   :  { %434 = vmatmul.bf16.gmra.mxu0 %v1804_v57 }
  0x85   :  { %523 = vmatmul.bf16.gmra.mxu1 %v1806_v58 }
  0x94   :  { %439 = vmatmul.bf16.gmra.mxu0 %v1810_v5 }
  0x95   :  { %528 = vmatmul.bf16.gmra.mxu1 %v1812_v6 }
  0xa4   :  { %444 = vmatmul.bf16.gmra.mxu0 %v1816_v14 }
  0xa5   :  { %533 = vmatmul.bf16.gmra.mxu1 %v1818_v15 }
  0xb1   :  { %v410_v24 = vpop.f32.mrf.mxu0 }
  0xb2   :  { %v499_v25 = vpop.f32.mrf.mxu1 }
  0xb3   :  { %v500_v28 = vadd.f32 %v499_v25, %v410_v24 }
  0xb4   :  { %449 = vmatmul.bf16.gmra.mxu0 %v1822_v22 }
  0xb5   :  { %v579_v29 = vmax.f32 %v500_v28, 0.0  ;;  %538 = vmatmul.bf16.gmra.mxu1 %v1824_v23 }
  0xb7   :  { %643 = vmatmul.f32.vlgmr.msra.gmra.mxu2 %v579_v29 }
  0xb9   :  { %v412_v30 = vpop.f32.mrf.mxu0 }
  0xba   :  { %v501_v31 = vpop.f32.mrf.mxu1 }
  0xbb   :  { %v502_v34 = vadd.f32 %v501_v31, %v412_v30  ;;  %v1440_v30 = vld [vmem:[#allocation2 + $0xc0] sm:$0xf]  ;;  %v1559_v31 = vld [vmem:[#allocation2 + $0xc4] sm:$0xf0] }
  0xbc   :  { %v1846_v36 = vor.u32 %v1559_v31, %v1440_v30 }
  0xbd   :  { %v580_v35 = vmax.f32 %v502_v34, 0.0  ;;  %v1558_v34 = vld [vmem:[#allocation2 + $0xc4] sm:$0xf] }
  0xbf   :  { %646 = vmatmul.f32.gmra.mxu2 %v580_v35  ;;  %v1442_v35 = vld [vmem:[#allocation2 + $0xc8] sm:$0xf0] }
  0xc0   :  { %v1848_v37 = vor.u32 %v1558_v34, %v1442_v35  ;;  %v1464_v34 = vld [vmem:[#allocation2 + $0xf0] sm:$0xf]  ;;  %v1565_v35 = vld [vmem:[#allocation2 + $0xf4] sm:$0xf0] }
  0xc1   :  { %v415_v46 = vpop.f32.mrf.mxu0 }
  0xc2   :  { %v504_v47 = vpop.f32.mrf.mxu1 }
  0xc3   :  { %v505_v48 = vadd.f32 %v504_v47, %v415_v46 }
  0xc4   :  { %454 = vmatmul.bf16.gmra.mxu0 %v1828_v42 }
  0xc5   :  { %v581_v49 = vmax.f32 %v505_v48, 0.0  ;;  %543 = vmatmul.bf16.gmra.mxu1 %v1830_v43 }
  0xc7   :  { %649 = vmatmul.f32.gmra.mxu2 %v581_v49 }
  0xc9   :  { %v417_v50 = vpop.f32.mrf.mxu0 }
  0xca   :  { %v506_v51 = vpop.f32.mrf.mxu1 }
  0xcb   :  { %v507_v52 = vadd.f32 %v506_v51, %v417_v50 }
  0xcd   :  { %v582_v53 = vmax.f32 %v507_v52, 0.0  ;;  %v1448_v52 = vld [vmem:[#allocation2 + $0xd0] sm:$0xf] }
  0xcf   :  { %652 = vmatmul.f32.gmra.mxu2 %v582_v53  ;;  %v1561_v53 = vld [vmem:[#allocation2 + $0xd4] sm:$0xf0] }
  0xd0   :  { %v1852_v56 = vor.u32 %v1561_v53, %v1448_v52 }
  0xd1   :  { %v420_v62 = vpop.f32.mrf.mxu0 }
  0xd2   :  { %v509_v63 = vpop.f32.mrf.mxu1 }
  0xd3   :  { %v510_v0 = vadd.f32 %v509_v63, %v420_v62 }
  0xd4   :  { %459 = vmatmul.bf16.gmra.mxu0 %v1834_v60 }
  0xd5   :  { %v583_v1 = vmax.f32 %v510_v0, 0.0  ;;  %548 = vmatmul.bf16.gmra.mxu1 %v1836_v61 }
  0xd7   :  { %655 = vmatmul.f32.gmra.mxu2 %v583_v1 }
  0xd9   :  { %v422_v2 = vpop.f32.mrf.mxu0 }
  0xda   :  { %v511_v3 = vpop.f32.mrf.mxu1 }
  0xdb   :  { %v512_v4 = vadd.f32 %v511_v3, %v422_v2 }
  0xdd   :  { %v584_v7 = vmax.f32 %v512_v4, 0.0 }
  0xdf   :  { %658 = vmatmul.f32.gmra.mxu2 %v584_v7 }
  0xe1   :  { %v425_v16 = vpop.f32.mrf.mxu0 }
  0xe2   :  { %v514_v17 = vpop.f32.mrf.mxu1 }
  0xe3   :  { %v515_v18 = vadd.f32 %v514_v17, %v425_v16  ;;  %v1858_v16 = vor.u32 %v1563_v9, %v1456_v8  ;;  %v1860_v17 = vor.u32 %v1562_v10, %v1458_v11 }
  0xe4   :  { %464 = vmatmul.bf16.gmra.mxu0 %v1840_v12 }
  0xe5   :  { %v585_v19 = vmax.f32 %v515_v18, 0.0  ;;  %553 = vmatmul.bf16.gmra.mxu1 %v1842_v13 }
  0xe7   :  { %661 = vmatmul.f32.gmra.mxu2 %v585_v19 }
  0xe9   :  { %v427_v24 = vpop.f32.mrf.mxu0 }
  0xea   :  { %v516_v25 = vpop.f32.mrf.mxu1 }
  0xeb   :  { %v517_v28 = vadd.f32 %v516_v25, %v427_v24 }
  0xed   :  { %v586_v29 = vmax.f32 %v517_v28, 0.0 }
  0xef   :  { %664 = vmatmul.f32.gmra.mxu2 %v586_v29 }
  0xf1   :  { %v430_v40 = vpop.f32.mrf.mxu0 }
  0xf2   :  { %v519_v41 = vpop.f32.mrf.mxu1 }
  0xf3   :  { %v520_v46 = vadd.f32 %v519_v41, %v430_v40  ;;  %v1564_v40 = vld [vmem:[#allocation2 + $0xf4] sm:$0xf]  ;;  %v1466_v41 = vld [vmem:[#allocation2 + $0xf8] sm:$0xf0] }
  0xf4   :  { %469 = vmatmul.bf16.gmra.mxu0 %v1846_v36 }
  0xf5   :  { %558 = vmatmul.bf16.gmra.mxu1 %v1848_v37  ;;  %v587_v47 = vmax.f32 %v520_v46, 0.0  ;;  %v1864_v46 = vor.u32 %v1565_v35, %v1464_v34 }
  0xf7   :  { %667 = vmatmul.f32.gmra.mxu2 %v587_v47  ;;  %v1866_v47 = vor.u32 %v1564_v40, %v1466_v41 }
  0xf9   :  { %v432_v48 = vpop.f32.mrf.mxu0 }
  0xfa   :  { %v521_v49 = vpop.f32.mrf.mxu1 }
  0xfb   :  { %v522_v50 = vadd.f32 %v521_v49, %v432_v48 }
  0xfd   :  { %v588_v51 = vmax.f32 %v522_v50, 0.0 }
  0xff   :  { %670 = vmatmul.f32.gmra.mxu2 %v588_v51 }
 0x101   :  { %v435_v62 = vpop.f32.mrf.mxu0 }
 0x102   :  { %v524_v63 = vpop.f32.mrf.mxu1 }
 0x103   :  { %v525_v0 = vadd.f32 %v524_v63, %v435_v62 }
 0x104   :  { %474 = vmatmul.bf16.gmra.mxu0 %v1852_v56 }
 0x105   :  { %563 = vmatmul.bf16.gmra.mxu1 %v1854_v59  ;;  %v589_v1 = vmax.f32 %v525_v0, 0.0 }
 0x107   :  { %673 = vmatmul.f32.gmra.mxu2 %v589_v1 }
 0x109   :  { %v437_v2 = vpop.f32.mrf.mxu0 }
 0x10a   :  { %v526_v3 = vpop.f32.mrf.mxu1 }
 0x10b   :  { %v527_v4 = vadd.f32 %v526_v3, %v437_v2 }
 0x10d   :  { %v590_v7 = vmax.f32 %v527_v4, 0.0 }
 0x10f   :  { %676 = vmatmul.f32.gmra.mxu2 %v590_v7 }
 0x111   :  { %v440_v18 = vpop.f32.mrf.mxu0 }
 0x112   :  { %v529_v19 = vpop.f32.mrf.mxu1 }
 0x113   :  { %v530_v24 = vadd.f32 %v529_v19, %v440_v18 }
 0x114   :  { %479 = vmatmul.bf16.gmra.mxu0 %v1858_v16 }
 0x115   :  { %568 = vmatmul.bf16.gmra.mxu1 %v1860_v17  ;;  %v591_v25 = vmax.f32 %v530_v24, 0.0 }
 0x117   :  { %679 = vmatmul.f32.gmra.mxu2 %v591_v25 }
 0x119   :  { %v442_v28 = vpop.f32.mrf.mxu0 }
 0x11a   :  { %v531_v29 = vpop.f32.mrf.mxu1 }
 0x11b   :  { %v532_v30 = vadd.f32 %v531_v29, %v442_v28 }
 0x11d   :  { %v592_v31 = vmax.f32 %v532_v30, 0.0 }
 0x11f   :  { %682 = vmatmul.f32.gmra.mxu2 %v592_v31 }
 0x121   :  { %v445_v48 = vpop.f32.mrf.mxu0 }
 0x122   :  { %v534_v49 = vpop.f32.mrf.mxu1 }
 0x123   :  { %v535_v50 = vadd.f32 %v534_v49, %v445_v48 }
 0x124   :  { %484 = vmatmul.bf16.gmra.mxu0 %v1864_v46 }
 0x125   :  { %573 = vmatmul.bf16.gmra.mxu1 %v1866_v47  ;;  %v593_v51 = vmax.f32 %v535_v50, 0.0 }
 0x127   :  { %685 = vmatmul.f32.gmra.mxu2 %v593_v51 }
 0x129   :  { %v447_v52 = vpop.f32.mrf.mxu0 }
 0x12a   :  { %v536_v53 = vpop.f32.mrf.mxu1 }
 0x12b   :  { %v537_v54 = vadd.f32 %v536_v53, %v447_v52 }
 0x12d   :  { %v594_v55 = vmax.f32 %v537_v54, 0.0 }
 0x12f   :  { %688 = vmatmul.f32.gmra.mxu2 %v594_v55 }
 0x131   :  { %v450_v62 = vpop.f32.mrf.mxu0 }
 0x132   :  { %v539_v63 = vpop.f32.mrf.mxu1 }
 0x133   :  { %v540_v0 = vadd.f32 %v539_v63, %v450_v62 }
 0x135   :  { %v595_v1 = vmax.f32 %v540_v0, 0.0 }
 0x137   :  { %691 = vmatmul.f32.gmra.mxu2 %v595_v1 }
 0x139   :  { %v452_v2 = vpop.f32.mrf.mxu0 }
 0x13a   :  { %v541_v3 = vpop.f32.mrf.mxu1  ;;  %v1870_v7 = vpop.f32.mrf.mxu2 }
 0x13b   :  { %v542_v4 = vadd.f32 %v541_v3, %v452_v2 }
 0x13d   :  { %v596_v8 = vmax.f32 %v542_v4, 0.0 }
 0x13f   :  { %694 = vmatmul.f32.gmra.mxu2 %v596_v8 }
 0x141   :  { %v455_v9 = vpop.f32.mrf.mxu0 }
 0x142   :  { %v544_v10 = vpop.f32.mrf.mxu1  ;;  %v1872_v18 = vpop.f32.mrf.mxu2 }
 0x143   :  { %v545_v11 = vadd.f32 %v544_v10, %v455_v9  ;;  %v740_v19 = vpack.c.bf16 %v1872_v18, %v1870_v7 }
 0x145   :  { %v597_v24 = vmax.f32 %v545_v11, 0.0 }
 0x147   :  { %697 = vmatmul.f32.gmra.mxu2 %v597_v24 }
 0x149   :  { %v457_v25 = vpop.f32.mrf.mxu0 }
 0x14a   :  { %v546_v28 = vpop.f32.mrf.mxu1  ;;  %v1876_v30 = vpop.f32.mrf.mxu2 }
 0x14b   :  { %v547_v29 = vadd.f32 %v546_v28, %v457_v25 }
 0x14d   :  { %v598_v31 = vmax.f32 %v547_v29, 0.0 }
 0x14f   :  { %700 = vmatmul.f32.gmra.mxu2 %v598_v31 }
 0x151   :  { %v460_v34 = vpop.f32.mrf.mxu0 }
 0x152   :  { %v549_v35 = vpop.f32.mrf.mxu1  ;;  %v1878_v41 = vpop.f32.mrf.mxu2 }
 0x153   :  { %v550_v40 = vadd.f32 %v549_v35, %v460_v34  ;;  %v741_v48 = vpack.c.bf16 %v1878_v41, %v1876_v30 }
 0x155   :  { %v599_v49 = vmax.f32 %v550_v40, 0.0 }
 0x157   :  { %703 = vmatmul.f32.gmra.mxu2 %v599_v49 }
 0x159   :  { %v462_v50 = vpop.f32.mrf.mxu0 }
 0x15a   :  { %v551_v51 = vpop.f32.mrf.mxu1  ;;  %v1882_v53 = vpop.f32.mrf.mxu2 }
 0x15b   :  { %v552_v52 = vadd.f32 %v551_v51, %v462_v50 }
 0x15d   :  { %v600_v54 = vmax.f32 %v552_v52, 0.0 }
 0x15f   :  { %706 = vmatmul.f32.gmra.mxu2 %v600_v54 }
 0x161   :  { %v465_v55 = vpop.f32.mrf.mxu0 }
 0x162   :  { %v554_v62 = vpop.f32.mrf.mxu1  ;;  %v1884_v0 = vpop.f32.mrf.mxu2 }
 0x163   :  { %v555_v63 = vadd.f32 %v554_v62, %v465_v55  ;;  %v742_v1 = vpack.c.bf16 %v1884_v0, %v1882_v53 }
 0x165   :  { %v601_v2 = vmax.f32 %v555_v63, 0.0 }
 0x167   :  { %709 = vmatmul.f32.gmra.mxu2 %v601_v2 }
 0x169   :  { %v467_v3 = vpop.f32.mrf.mxu0 }
 0x16a   :  { %v556_v4 = vpop.f32.mrf.mxu1  ;;  %v1888_v9 = vpop.f32.mrf.mxu2 }
 0x16b   :  { %v557_v8 = vadd.f32 %v556_v4, %v467_v3 }
 0x16d   :  { %v602_v10 = vmax.f32 %v557_v8, 0.0 }
 0x16f   :  { %712 = vmatmul.f32.gmra.mxu2 %v602_v10 }
 0x171   :  { %v470_v11 = vpop.f32.mrf.mxu0 }
 0x172   :  { %v559_v24 = vpop.f32.mrf.mxu1  ;;  %v665_v28 = vpop.f32.mrf.mxu2 }
 0x173   :  { %v560_v25 = vadd.f32 %v559_v24, %v470_v11  ;;  %v743_v29 = vpack.c.bf16 %v665_v28, %v1888_v9 }
 0x175   :  { %v603_v31 = vmax.f32 %v560_v25, 0.0 }
 0x177   :  { %715 = vmatmul.f32.gmra.mxu2 %v603_v31 }
 0x179   :  { %v472_v34 = vpop.f32.mrf.mxu0 }
 0x17a   :  { %v561_v35 = vpop.f32.mrf.mxu1  ;;  %v668_v49 = vpop.f32.mrf.mxu2 }
 0x17b   :  { %v562_v40 = vadd.f32 %v561_v35, %v472_v34 }
 0x17d   :  { %v604_v50 = vmax.f32 %v562_v40, 0.0 }
 0x17f   :  { %718 = vmatmul.f32.gmra.mxu2 %v604_v50 }
 0x181   :  { %v475_v51 = vpop.f32.mrf.mxu0 }
 0x182   :  { %v564_v52 = vpop.f32.mrf.mxu1  ;;  %v671_v55 = vpop.f32.mrf.mxu2 }
 0x183   :  { %v565_v54 = vadd.f32 %v564_v52, %v475_v51 }
 0x185   :  { %v605_v62 = vmax.f32 %v565_v54, 0.0 }
 0x187   :  { %721 = vmatmul.f32.gmra.mxu2 %v605_v62 }
 0x189   :  { %v477_v63 = vpop.f32.mrf.mxu0 }
 0x18a   :  { %v566_v2 = vpop.f32.mrf.mxu1  ;;  %v674_v4 = vpop.f32.mrf.mxu2 }
 0x18b   :  { %v567_v3 = vadd.f32 %v566_v2, %v477_v63 }
 0x18d   :  { %v606_v8 = vmax.f32 %v567_v3, 0.0 }
 0x18f   :  { %724 = vmatmul.f32.gmra.mxu2 %v606_v8 }
 0x191   :  { %v480_v9 = vpop.f32.mrf.mxu0 }
 0x192   :  { %v569_v10 = vpop.f32.mrf.mxu1  ;;  %v677_v24 = vpop.f32.mrf.mxu2 }
 0x193   :  { %v570_v11 = vadd.f32 %v569_v10, %v480_v9 }
 0x195   :  { %v607_v25 = vmax.f32 %v570_v11, 0.0 }
 0x197   :  { %727 = vmatmul.f32.gmra.mxu2 %v607_v25 }
 0x199   :  { %v482_v28 = vpop.f32.mrf.mxu0 }
 0x19a   :  { %v571_v31 = vpop.f32.mrf.mxu1  ;;  %v680_v35 = vpop.f32.mrf.mxu2 }
 0x19b   :  { %v572_v34 = vadd.f32 %v571_v31, %v482_v28  ;;  %v745_v31 = vpack.c.bf16 %v677_v24, %v674_v4 }
 0x19d   :  { %v608_v40 = vmax.f32 %v572_v34, 0.0  ;;  %v744_v34 = vpack.c.bf16 %v671_v55, %v668_v49 }
 0x19f   :  { %730 = vmatmul.f32.gmra.mxu2 %v608_v40 }
 0x1a1   :  { %v485_v50 = vpop.f32.mrf.mxu0 }
 0x1a2   :  { %v574_v51 = vpop.f32.mrf.mxu1  ;;  %v683_v54 = vpop.f32.mrf.mxu2 }
 0x1a3   :  { %v575_v52 = vadd.f32 %v574_v51, %v485_v50  ;;  %v746_v25 = vpack.c.bf16 %v683_v54, %v680_v35 }
 0x1a5   :  { %v609_v62 = vmax.f32 %v575_v52, 0.0 }
 0x1a7   :  { %733 = vmatmul.f32.gmra.mxu2 %v609_v62 }
 0x1a9   :  { %v487_v63 = vpop.f32.mrf.mxu0 }
 0x1aa   :  { %v576_v2 = vpop.f32.mrf.mxu1  ;;  %v686_v8 = vpop.f32.mrf.mxu2 }
 0x1ab   :  { %v577_v3 = vadd.f32 %v576_v2, %v487_v63 }
 0x1ad   :  { %v610_v9 = vmax.f32 %v577_v3, 0.0  ;;  %v981_v3 = vld [vmem:[#allocation8 + $0x78] sm:$0xff] }
 0x1ae   :  { %982 = vmatpush.msrb.mxu1 %v981_v3 }
 0x1af   :  { %736 = vmatmul.f32.gmra.mxu2 %v610_v9  ;;  %v979_v9 = vld [vmem:[#allocation8 + $0x68] sm:$0xff] }
 0x1b2   :  { %v689_v10 = vpop.f32.mrf.mxu2 }
 0x1b3   :  { %v747_v11 = vpack.c.bf16 %v689_v10, %v686_v8  ;;  %v980_v8 = vld [vmem:[#allocation8 + $0x70] sm:$0xff]  ;;  %v978_v10 = vld [vmem:[#allocation8 + $0x60] sm:$0xff] }
 0x1b4   :  { %983 = vmatpush.msrb.mxu1 %v980_v8 }
 0x1b5   :  { %756 = vmatpush.bf16.msra.mxu3 %v747_v11  ;;  %v977_v11 = vld [vmem:[#allocation8 + $0x58] sm:$0xff] }
 0x1b6   :  { %984 = vmatpush.msrb.mxu1 %v979_v9 }
 0x1b8   :  { %985 = vmatpush.msrb.mxu1 %v978_v10 }
 0x1b9   :  { %757 = vmatpush.bf16.msra.mxu3 %v746_v25  ;;  %v976_v25 = vld [vmem:[#allocation8 + $0x50] sm:$0xff] }
 0x1ba   :  { %v692_v28 = vpop.f32.mrf.mxu2  ;;  %986 = vmatpush.msrb.mxu1 %v977_v11 }
 0x1bc   :  { %987 = vmatpush.msrb.mxu1 %v976_v25 }
 0x1bd   :  { %758 = vmatpush.bf16.msra.mxu3 %v745_v31  ;;  %v974_v31 = vld [vmem:[#allocation8 + $0x40] sm:$0xff] }
 0x1c1   :  { %759 = vmatpush.bf16.msra.mxu3 %v744_v34  ;;  %v973_v34 = vld [vmem:[#allocation8 + $0x38] sm:$0xff] }
 0x1c2   :  { %v695_v40 = vpop.f32.mrf.mxu2 }
 0x1c3   :  { %v748_v2 = vpack.c.bf16 %v695_v40, %v692_v28  ;;  %v975_v28 = vld [vmem:[#allocation8 + $0x48] sm:$0xff] }
 0x1c4   :  { %988 = vmatpush.msrb.mxu1 %v975_v28 }
 0x1c5   :  { %760 = vmatpush.bf16.msra.mxu3 %v743_v29 }
 0x1c6   :  { %989 = vmatpush.msrb.mxu1 %v974_v31 }
 0x1c8   :  { %990 = vmatpush.msrb.mxu1 %v973_v34 }
 0x1c9   :  { %761 = vmatpush.bf16.msra.mxu3 %v742_v1 }
 0x1ca   :  { %v698_v50 = vpop.f32.mrf.mxu2 }
 0x1cd   :  { %762 = vmatpush.bf16.msra.mxu3 %v741_v48 }
 0x1d1   :  { %763 = vmatpush.bf16.msra.mxu3 %v740_v19 }
 0x1d2   :  { %v701_v35 = vpop.f32.mrf.mxu2 }
 0x1d3   :  { %v749_v63 = vpack.c.bf16 %v701_v35, %v698_v50  ;;  %v972_v50 = vld [vmem:[#allocation8 + $0x30] sm:$0xff]  ;;  %v971_v35 = vld [vmem:[#allocation8 + $0x28] sm:$0xff] }
 0x1d4   :  { %764 = vmatmul.bf16.vlgmr.msra.gmra.mxu3 %v1774_v20  ;;  %991 = vmatpush.msrb.mxu1 %v972_v50 }
 0x1d6   :  { %992 = vmatpush.msrb.mxu1 %v971_v35 }
 0x1da   :  { %v704_v49 = vpop.f32.mrf.mxu2 }
 0x1e2   :  { %v707_v55 = vpop.f32.mrf.mxu2 }
 0x1e3   :  { %v750_v62 = vpack.c.bf16 %v707_v55, %v704_v49  ;;  %v970_v49 = vld [vmem:[#allocation8 + $0x20] sm:$0xff]  ;;  %v969_v55 = vld [vmem:[#allocation8 + $0x18] sm:$0xff] }
 0x1e4   :  { %769 = vmatmul.bf16.gmra.mxu3 %v1780_v26  ;;  %993 = vmatpush.msrb.mxu1 %v970_v49 }
 0x1e6   :  { %994 = vmatpush.msrb.mxu1 %v969_v55 }
 0x1ea   :  { %v710_v29 = vpop.f32.mrf.mxu2 }
 0x1f2   :  { %v713_v4 = vpop.f32.mrf.mxu2 }
 0x1f3   :  { %v751_v54 = vpack.c.bf16 %v713_v4, %v710_v29  ;;  %v968_v4 = vld [vmem:[#allocation8 + $0x10] sm:$0xff] }
 0x1f4   :  { %774 = vmatmul.bf16.gmra.mxu3 %v1786_v32  ;;  %995 = vmatpush.msrb.mxu1 %v968_v4 }
 0x1fa   :  { %v716_v53 = vpop.f32.mrf.mxu2 }
 0x202   :  { %v719_v0 = vpop.f32.mrf.mxu2 }
 0x203   :  { %v752_v52 = vpack.c.bf16 %v719_v0, %v716_v53  ;;  %v967_v53 = vld [vmem:[#allocation8 + $0x8] sm:$0xff]  ;;  %v966_v0 = vld [vmem:[#allocation8] sm:$0xff] }
 0x204   :  { %779 = vmatmul.bf16.gmra.mxu3 %v1792_v38  ;;  %996 = vmatpush.msrb.mxu1 %v967_v53 }
 0x206   :  { %997 = vmatpush.msrb.mxu1 %v966_v0 }
 0x20a   :  { %v722_v30 = vpop.f32.mrf.mxu2 }
 0x212   :  { %v725_v41 = vpop.f32.mrf.mxu2 }
 0x213   :  { %v753_v51 = vpack.c.bf16 %v725_v41, %v722_v30 }
 0x214   :  { %784 = vmatmul.bf16.gmra.mxu3 %v1798_v44 }
 0x21a   :  { %v728_v7 = vpop.f32.mrf.mxu2 }
 0x222   :  { %v731_v18 = vpop.f32.mrf.mxu2 }
 0x223   :  { %v754_v24 = vpack.c.bf16 %v731_v18, %v728_v7 }
 0x224   :  { %789 = vmatmul.bf16.gmra.mxu3 %v1804_v57 }
 0x22a   :  { %v734_v19 = vpop.f32.mrf.mxu2 }
 0x232   :  { %v737_v48 = vpop.f32.mrf.mxu2 }
 0x233   :  { %v755_v1 = vpack.c.bf16 %v737_v48, %v734_v19 }
 0x234   :  { %794 = vmatmul.bf16.gmra.mxu3 %v1810_v5 }
 0x235   :  { %845 = vmatpush.bf16.msrb.mxu0 %v755_v1 }
 0x239   :  { %846 = vmatpush.bf16.msrb.mxu0 %v754_v24 }
 0x23d   :  { %847 = vmatpush.bf16.msrb.mxu0 %v753_v51 }
 0x241   :  { %848 = vmatpush.bf16.msrb.mxu0 %v752_v52 }
 0x244   :  { %799 = vmatmul.bf16.gmra.mxu3 %v1816_v14 }
 0x245   :  { %849 = vmatpush.bf16.msrb.mxu0 %v751_v54 }
 0x249   :  { %850 = vmatpush.bf16.msrb.mxu0 %v750_v62 }
 0x24d   :  { %851 = vmatpush.bf16.msrb.mxu0 %v749_v63 }
 0x251   :  { %852 = vmatpush.bf16.msrb.mxu0 %v748_v2 }
 0x254   :  { %853 = vmatmul.bf16.vlgmr.msrb.gmra.mxu0 %v1776_v21  ;;  %804 = vmatmul.bf16.gmra.mxu3 %v1822_v22 }
 0x257   :  { %v765_v40 = vpop.f32.mrf.mxu3 }
 0x25f   :  { %v767_v29 = vpop.f32.mrf.mxu3 }
 0x264   :  { %858 = vmatmul.bf16.gmra.mxu0 %v1782_v27  ;;  %809 = vmatmul.bf16.gmra.mxu3 %v1828_v42 }
 0x267   :  { %v770_v30 = vpop.f32.mrf.mxu3 }
 0x26f   :  { %v772_v41 = vpop.f32.mrf.mxu3 }
 0x274   :  { %863 = vmatmul.bf16.gmra.mxu0 %v1788_v33  ;;  %814 = vmatmul.bf16.gmra.mxu3 %v1834_v60 }
 0x277   :  { %v775_v7 = vpop.f32.mrf.mxu3 }
 0x27f   :  { %v777_v18 = vpop.f32.mrf.mxu3 }
 0x284   :  { %868 = vmatmul.bf16.gmra.mxu0 %v1794_v39  ;;  %819 = vmatmul.bf16.gmra.mxu3 %v1840_v12 }
 0x287   :  { %v780_v24 = vpop.f32.mrf.mxu3 }
 0x28f   :  { %v782_v62 = vpop.f32.mrf.mxu3 }
 0x294   :  { %873 = vmatmul.bf16.gmra.mxu0 %v1800_v45  ;;  %824 = vmatmul.bf16.gmra.mxu3 %v1846_v36 }
 0x297   :  { %v785_v8 = vpop.f32.mrf.mxu3 }
 0x29f   :  { %v787_v25 = vpop.f32.mrf.mxu3 }
 0x2a4   :  { %878 = vmatmul.bf16.gmra.mxu0 %v1806_v58  ;;  %829 = vmatmul.bf16.gmra.mxu3 %v1852_v56 }
 0x2b4   :  { %883 = vmatmul.bf16.gmra.mxu0 %v1812_v6  ;;  %834 = vmatmul.bf16.gmra.mxu3 %v1858_v16 }
 0x2c4   :  { %888 = vmatmul.bf16.gmra.mxu0 %v1818_v15  ;;  %839 = vmatmul.bf16.gmra.mxu3 %v1864_v46 }
 0x2d1   :  { %v854_v19 = vpop.f32.mrf.mxu0 }
 0x2d2   :  { %v855_v48 = vadd.f32 %v854_v19, %v765_v40  ;;  %v790_v40 = vpop.f32.mrf.mxu3 }
 0x2d4   :  { %v934_v1 = vmax.f32 %v855_v48, 0.0  ;;  %893 = vmatmul.bf16.gmra.mxu0 %v1824_v23 }
 0x2d6   :  { %998 = vmatmul.f32.vlgmr.msrb.gmra.mxu1 %v934_v1 }
 0x2d9   :  { %v856_v51 = vpop.f32.mrf.mxu0 }
 0x2da   :  { %v857_v52 = vadd.f32 %v856_v51, %v767_v29  ;;  %v792_v29 = vpop.f32.mrf.mxu3 }
 0x2dc   :  { %v935_v54 = vmax.f32 %v857_v52, 0.0 }
 0x2de   :  { %1001 = vmatmul.f32.gmra.mxu1 %v935_v54 }
 0x2e1   :  { %v859_v63 = vpop.f32.mrf.mxu0 }
 0x2e2   :  { %v860_v2 = vadd.f32 %v859_v63, %v770_v30 }
 0x2e4   :  { %v936_v3 = vmax.f32 %v860_v2, 0.0  ;;  %898 = vmatmul.bf16.gmra.mxu0 %v1830_v43 }
 0x2e6   :  { %1004 = vmatmul.f32.gmra.mxu1 %v936_v3 }
 0x2e9   :  { %v861_v9 = vpop.f32.mrf.mxu0 }
 0x2ea   :  { %v862_v10 = vadd.f32 %v861_v9, %v772_v41  ;;  %v795_v41 = vpop.f32.mrf.mxu3 }
 0x2ec   :  { %v937_v11 = vmax.f32 %v862_v10, 0.0 }
 0x2ee   :  { %1007 = vmatmul.f32.gmra.mxu1 %v937_v11 }
 0x2f1   :  { %v864_v28 = vpop.f32.mrf.mxu0 }
 0x2f2   :  { %v865_v31 = vadd.f32 %v864_v28, %v775_v7 }
 0x2f4   :  { %v938_v34 = vmax.f32 %v865_v31, 0.0  ;;  %903 = vmatmul.bf16.gmra.mxu0 %v1836_v61 }
 0x2f6   :  { %1010 = vmatmul.f32.gmra.mxu1 %v938_v34 }
 0x2f9   :  { %v866_v50 = vpop.f32.mrf.mxu0 }
 0x2fa   :  { %v867_v35 = vadd.f32 %v866_v50, %v777_v18  ;;  %v797_v18 = vpop.f32.mrf.mxu3 }
 0x2fc   :  { %v939_v49 = vmax.f32 %v867_v35, 0.0 }
 0x2fe   :  { %1013 = vmatmul.f32.gmra.mxu1 %v939_v49 }
 0x301   :  { %v869_v55 = vpop.f32.mrf.mxu0 }
 0x302   :  { %v870_v4 = vadd.f32 %v869_v55, %v780_v24  ;;  %v800_v24 = vpop.f32.mrf.mxu3 }
 0x304   :  { %v940_v53 = vmax.f32 %v870_v4, 0.0  ;;  %908 = vmatmul.bf16.gmra.mxu0 %v1842_v13 }
 0x306   :  { %1016 = vmatmul.f32.gmra.mxu1 %v940_v53 }
 0x309   :  { %v871_v0 = vpop.f32.mrf.mxu0 }
 0x30a   :  { %v872_v30 = vadd.f32 %v871_v0, %v782_v62  ;;  %v802_v9 = vpop.f32.mrf.mxu3 }
 0x30c   :  { %v941_v7 = vmax.f32 %v872_v30, 0.0 }
 0x30e   :  { %1019 = vmatmul.f32.gmra.mxu1 %v941_v7 }
 0x311   :  { %v874_v19 = vpop.f32.mrf.mxu0 }
 0x312   :  { %v875_v48 = vadd.f32 %v874_v19, %v785_v8  ;;  %v805_v31 = vpop.f32.mrf.mxu3 }
 0x314   :  { %v942_v1 = vmax.f32 %v875_v48, 0.0  ;;  %913 = vmatmul.bf16.gmra.mxu0 %v1848_v37 }
 0x316   :  { %1022 = vmatmul.f32.gmra.mxu1 %v942_v1 }
 0x319   :  { %v876_v51 = vpop.f32.mrf.mxu0 }
 0x31a   :  { %v877_v52 = vadd.f32 %v876_v51, %v787_v25 }
 0x31c   :  { %v943_v54 = vmax.f32 %v877_v52, 0.0 }
 0x31e   :  { %1025 = vmatmul.f32.gmra.mxu1 %v943_v54 }
 0x321   :  { %v879_v63 = vpop.f32.mrf.mxu0 }
 0x322   :  { %v880_v2 = vadd.f32 %v879_v63, %v790_v40  ;;  %v807_v40 = vpop.f32.mrf.mxu3 }
 0x324   :  { %v944_v3 = vmax.f32 %v880_v2, 0.0  ;;  %918 = vmatmul.bf16.gmra.mxu0 %v1854_v59 }
 0x326   :  { %1028 = vmatmul.f32.gmra.mxu1 %v944_v3 }
 0x329   :  { %v881_v62 = vpop.f32.mrf.mxu0 }
 0x32a   :  { %v882_v10 = vadd.f32 %v881_v62, %v792_v29  ;;  %v810_v29 = vpop.f32.mrf.mxu3 }
 0x32c   :  { %v945_v8 = vmax.f32 %v882_v10, 0.0 }
 0x32e   :  { %1031 = vmatmul.f32.gmra.mxu1 %v945_v8 }
 0x331   :  { %v884_v11 = vpop.f32.mrf.mxu0 }
 0x332   :  { %v885_v28 = vadd.f32 %v884_v11, %v795_v41  ;;  %v812_v7 = vpop.f32.mrf.mxu3 }
 0x334   :  { %v946_v34 = vmax.f32 %v885_v28, 0.0  ;;  %923 = vmatmul.bf16.gmra.mxu0 %v1860_v17 }
 0x336   :  { %1034 = vmatmul.f32.gmra.mxu1 %v946_v34 }
 0x339   :  { %v886_v25 = vpop.f32.mrf.mxu0 }
 0x33a   :  { %v887_v50 = vadd.f32 %v886_v25, %v797_v18  ;;  %v815_v54 = vpop.f32.mrf.mxu3 }
 0x33c   :  { %v947_v35 = vmax.f32 %v887_v50, 0.0 }
 0x33e   :  { %1037 = vmatmul.f32.gmra.mxu1 %v947_v35 }
 0x341   :  { %v889_v49 = vpop.f32.mrf.mxu0 }
 0x342   :  { %v890_v55 = vadd.f32 %v889_v49, %v800_v24 }
 0x344   :  { %v948_v4 = vmax.f32 %v890_v55, 0.0  ;;  %928 = vmatmul.bf16.gmra.mxu0 %v1866_v47 }
 0x346   :  { %1040 = vmatmul.f32.gmra.mxu1 %v948_v4 }
 0x349   :  { %v891_v53 = vpop.f32.mrf.mxu0 }
 0x34a   :  { %v892_v0 = vadd.f32 %v891_v53, %v802_v9  ;;  %v817_v9 = vpop.f32.mrf.mxu3 }
 0x34c   :  { %v949_v30 = vmax.f32 %v892_v0, 0.0 }
 0x34e   :  { %1043 = vmatmul.f32.gmra.mxu1 %v949_v30 }
 0x351   :  { %v894_v41 = vpop.f32.mrf.mxu0 }
 0x352   :  { %v895_v19 = vadd.f32 %v894_v41, %v805_v31  ;;  %v820_v31 = vpop.f32.mrf.mxu3 }
 0x353   :  { %v1932_v48 = vpop.f32.mrf.mxu1 }
 0x354   :  { %v950_v1 = vmax.f32 %v895_v19, 0.0 }
 0x356   :  { %1046 = vmatmul.f32.gmra.mxu1 %v950_v1 }
 0x359   :  { %v896_v18 = vpop.f32.mrf.mxu0 }
 0x35a   :  { %v897_v51 = vadd.f32 %v896_v18, %v807_v40  ;;  %v822_v49 = vpop.f32.mrf.mxu3 }
 0x35b   :  { %v1934_v52 = vpop.f32.mrf.mxu1 }
 0x35c   :  { %v951_v24 = vmax.f32 %v897_v51, 0.0 }
 0x35e   :  { %1049 = vmatmul.f32.gmra.mxu1 %v951_v24 }
 0x361   :  { %v899_v63 = vpop.f32.mrf.mxu0 }
 0x362   :  { %v900_v2 = vadd.f32 %v899_v63, %v810_v29  ;;  %v825_v41 = vpop.f32.mrf.mxu3 }
 0x363   :  { %v1936_v3 = vpop.f32.mrf.mxu1 }
 0x364   :  { %v952_v62 = vmax.f32 %v900_v2, 0.0 }
 0x366   :  { %1052 = vmatmul.f32.gmra.mxu1 %v952_v62 }
 0x369   :  { %v901_v10 = vpop.f32.mrf.mxu0 }
 0x36a   :  { %v902_v8 = vadd.f32 %v901_v10, %v812_v7 }
 0x36b   :  { %v1938_v11 = vpop.f32.mrf.mxu1 }
 0x36c   :  { %v953_v28 = vmax.f32 %v902_v8, 0.0 }
 0x36e   :  { %1055 = vmatmul.f32.gmra.mxu1 %v953_v28 }
 0x371   :  { %v904_v34 = vpop.f32.mrf.mxu0 }
 0x372   :  { %v905_v25 = vadd.f32 %v904_v34, %v815_v54  ;;  %v827_v54 = vpop.f32.mrf.mxu3 }
 0x373   :  { %v1940_v50 = vpop.f32.mrf.mxu1 }
 0x374   :  { %v954_v35 = vmax.f32 %v905_v25, 0.0 }
 0x376   :  { %1058 = vmatmul.f32.gmra.mxu1 %v954_v35 }
 0x379   :  { %v906_v40 = vpop.f32.mrf.mxu0 }
 0x37a   :  { %v907_v55 = vadd.f32 %v906_v40, %v817_v9  ;;  %v830_v9 = vpop.f32.mrf.mxu3 }
 0x37b   :  { %v1942_v4 = vpop.f32.mrf.mxu1 }
 0x37c   :  { %v955_v29 = vmax.f32 %v907_v55, 0.0 }
 0x37e   :  { %1061 = vmatmul.f32.gmra.mxu1 %v955_v29 }
 0x381   :  { %v909_v53 = vpop.f32.mrf.mxu0 }
 0x382   :  { %v910_v0 = vadd.f32 %v909_v53, %v820_v31  ;;  %v832_v34 = vpop.f32.mrf.mxu3 }
 0x383   :  { %v1944_v30 = vpop.f32.mrf.mxu1 }
 0x384   :  { %v956_v7 = vmax.f32 %v910_v0, 0.0 }
 0x386   :  { %1064 = vmatmul.f32.gmra.mxu1 %v956_v7 }
 0x389   :  { %v911_v19 = vpop.f32.mrf.mxu0 }
 0x38a   :  { %v912_v1 = vadd.f32 %v911_v19, %v822_v49  ;;  %v835_v53 = vpop.f32.mrf.mxu3 }
 0x38b   :  { %v1020_v18 = vpop.f32.mrf.mxu1 }
 0x38c   :  { %v957_v51 = vmax.f32 %v912_v1, 0.0 }
 0x38e   :  { %1067 = vmatmul.f32.gmra.mxu1 %v957_v51 }
 0x391   :  { %v914_v24 = vpop.f32.mrf.mxu0 }
 0x392   :  { %v915_v63 = vadd.f32 %v914_v24, %v825_v41 }
 0x393   :  { %v1023_v2 = vpop.f32.mrf.mxu1 }
 0x394   :  { %v958_v62 = vmax.f32 %v915_v63, 0.0 }
 0x396   :  { %1070 = vmatmul.f32.gmra.mxu1 %v958_v62 }
 0x399   :  { %v916_v10 = vpop.f32.mrf.mxu0 }
 0x39a   :  { %v917_v8 = vadd.f32 %v916_v10, %v827_v54  ;;  %v837_v54 = vpop.f32.mrf.mxu3 }
 0x39b   :  { %v1026_v28 = vpop.f32.mrf.mxu1 }
 0x39c   :  { %v959_v31 = vmax.f32 %v917_v8, 0.0 }
 0x39e   :  { %1073 = vmatmul.f32.gmra.mxu1 %v959_v31 }
 0x3a1   :  { %v919_v25 = vpop.f32.mrf.mxu0 }
 0x3a2   :  { %v920_v35 = vadd.f32 %v919_v25, %v830_v9  ;;  %v840_v9 = vpop.f32.mrf.mxu3 }
 0x3a3   :  { %v1029_v40 = vpop.f32.mrf.mxu1 }
 0x3a4   :  { %v960_v49 = vmax.f32 %v920_v35, 0.0 }
 0x3a6   :  { %1076 = vmatmul.f32.gmra.mxu1 %v960_v49 }
 0x3a9   :  { %v921_v55 = vpop.f32.mrf.mxu0 }
 0x3aa   :  { %v922_v29 = vadd.f32 %v921_v55, %v832_v34  ;;  %v842_v35 = vpop.f32.mrf.mxu3 }
 0x3ab   :  { %v1032_v0 = vpop.f32.mrf.mxu1 }
 0x3ac   :  { %v961_v41 = vmax.f32 %v922_v29, 0.0 }
 0x3ae   :  { %1079 = vmatmul.f32.gmra.mxu1 %v961_v41 }
 0x3b1   :  { %v924_v7 = vpop.f32.mrf.mxu0 }
 0x3b2   :  { %v925_v19 = vadd.f32 %v924_v7, %v835_v53 }
 0x3b3   :  { %v1035_v1 = vpop.f32.mrf.mxu1 }
 0x3b4   :  { %v962_v51 = vmax.f32 %v925_v19, 0.0 }
 0x3b6   :  { %1082 = vmatmul.f32.gmra.mxu1 %v962_v51  ;;  %v1100_v51 = vpack.c.bf16 %v1032_v0, %v1029_v40  ;;  %v1095_v40 = vpack.c.bf16 %v1934_v52, %v1932_v48 }
 0x3b9   :  { %v926_v24 = vpop.f32.mrf.mxu0 }
 0x3ba   :  { %v927_v63 = vadd.f32 %v926_v24, %v837_v54  ;;  %v1099_v54 = vpack.c.bf16 %v1026_v28, %v1023_v2 }
 0x3bb   :  { %v1038_v62 = vpop.f32.mrf.mxu1 }
 0x3bc   :  { %v963_v10 = vmax.f32 %v927_v63, 0.0  ;;  %v1101_v7 = vpack.c.bf16 %v1038_v62, %v1035_v1 }
 0x3be   :  { %1085 = vmatmul.f32.gmra.mxu1 %v963_v10  ;;  %v1098_v10 = vpack.c.bf16 %v1020_v18, %v1944_v30 }
 0x3c1   :  { %v929_v8 = vpop.f32.mrf.mxu0 }
 0x3c2   :  { %v930_v31 = vadd.f32 %v929_v8, %v840_v9  ;;  %v1097_v9 = vpack.c.bf16 %v1942_v4, %v1940_v50 }
 0x3c3   :  { %v1041_v25 = vpop.f32.mrf.mxu1 }
 0x3c4   :  { %v964_v34 = vmax.f32 %v930_v31, 0.0  ;;  %v1096_v31 = vpack.c.bf16 %v1938_v11, %v1936_v3 }
 0x3c6   :  { %1088 = vmatmul.f32.gmra.mxu1 %v964_v34 }
 0x3c9   :  { %v931_v49 = vpop.f32.mrf.mxu0 }
 0x3ca   :  { %v932_v55 = vadd.f32 %v931_v49, %v842_v35 }
 0x3cb   :  { %v1044_v29 = vpop.f32.mrf.mxu1 }
 0x3cc   :  { %v965_v53 = vmax.f32 %v932_v55, 0.0  ;;  %v1102_v41 = vpack.c.bf16 %v1044_v29, %v1041_v25 }
 0x3ce   :  { %1091 = vmatmul.f32.gmra.mxu1 %v965_v53  ;;  %1111 = vmatpush.bf16.msrb.mxu2 %v1102_v41 }
 0x3d2   :  { %1112 = vmatpush.bf16.msrb.mxu2 %v1101_v7 }
 0x3d3   :  { %v1047_v19 = vpop.f32.mrf.mxu1 }
 0x3d6   :  { %1113 = vmatpush.bf16.msrb.mxu2 %v1100_v51 }
 0x3da   :  { %1114 = vmatpush.bf16.msrb.mxu2 %v1099_v54 }
 0x3db   :  { %v1050_v24 = vpop.f32.mrf.mxu1 }
 0x3dc   :  { %v1103_v63 = vpack.c.bf16 %v1050_v24, %v1047_v19 }
 0x3de   :  { %1115 = vmatpush.bf16.msrb.mxu2 %v1098_v10 }
 0x3e2   :  { %1116 = vmatpush.bf16.msrb.mxu2 %v1097_v9 }
 0x3e3   :  { %v1053_v8 = vpop.f32.mrf.mxu1 }
 0x3e6   :  { %1117 = vmatpush.bf16.msrb.mxu2 %v1096_v31 }
 0x3ea   :  { %1118 = vmatpush.bf16.msrb.mxu2 %v1095_v40 }
 0x3eb   :  { %v1056_v2 = vpop.f32.mrf.mxu1 }
 0x3ec   :  { %v1104_v28 = vpack.c.bf16 %v1056_v2, %v1053_v8 }
 0x3ed   :  { %1119 = vmatmul.bf16.vlgmr.msrb.gmra.mxu2 %v1774_v20 }
 0x3f3   :  { %v1059_v0 = vpop.f32.mrf.mxu1 }
 0x3fb   :  { %v1062_v30 = vpop.f32.mrf.mxu1 }
 0x3fc   :  { %v1105_v18 = vpack.c.bf16 %v1062_v30, %v1059_v0 }
 0x3fd   :  { %1124 = vmatmul.bf16.gmra.mxu2 %v1780_v26 }
 0x403   :  { %v1065_v50 = vpop.f32.mrf.mxu1 }
 0x40b   :  { %v1068_v4 = vpop.f32.mrf.mxu1 }
 0x40c   :  { %v1106_v1 = vpack.c.bf16 %v1068_v4, %v1065_v50 }
 0x40d   :  { %1129 = vmatmul.bf16.gmra.mxu2 %v1786_v32 }
 0x413   :  { %v1071_v3 = vpop.f32.mrf.mxu1 }
 0x41b   :  { %v1074_v11 = vpop.f32.mrf.mxu1 }
 0x41c   :  { %v1107_v49 = vpack.c.bf16 %v1074_v11, %v1071_v3 }
 0x41d   :  { %1134 = vmatmul.bf16.gmra.mxu2 %v1792_v38 }
 0x423   :  { %v1077_v48 = vpop.f32.mrf.mxu1 }
 0x42b   :  { %v1080_v52 = vpop.f32.mrf.mxu1 }
 0x42c   :  { %v1108_v32 = vpack.c.bf16 %v1080_v52, %v1077_v48 }
 0x42d   :  { %1139 = vmatmul.bf16.gmra.mxu2 %v1798_v44 }
 0x433   :  { %v1083_v62 = vpop.f32.mrf.mxu1 }
 0x43b   :  { %v1086_v20 = vpop.f32.mrf.mxu1 }
 0x43c   :  { %v1109_v35 = vpack.c.bf16 %v1086_v20, %v1083_v62 }
 0x43d   :  { %1144 = vmatmul.bf16.gmra.mxu2 %v1804_v57 }
 0x443   :  { %v1089_v25 = vpop.f32.mrf.mxu1 }
 0x44b   :  { %v1092_v34 = vpop.f32.mrf.mxu1 }
 0x44c   :  { %v1110_v26 = vpack.c.bf16 %v1092_v34, %v1089_v25 }
 0x44d   :  { %1149 = vmatmul.bf16.gmra.mxu2 %v1810_v5 }
 0x44e   :  { %1200 = vmatpush.bf16.msrb.mxu3 %v1110_v26 }
 0x452   :  { %1201 = vmatpush.bf16.msrb.mxu3 %v1109_v35 }
 0x456   :  { %1202 = vmatpush.bf16.msrb.mxu3 %v1108_v32 }
 0x45a   :  { %1203 = vmatpush.bf16.msrb.mxu3 %v1107_v49 }
 0x45d   :  { %1154 = vmatmul.bf16.gmra.mxu2 %v1816_v14 }
 0x45e   :  { %1204 = vmatpush.bf16.msrb.mxu3 %v1106_v1 }
 0x462   :  { %1205 = vmatpush.bf16.msrb.mxu3 %v1105_v18 }
 0x466   :  { %1206 = vmatpush.bf16.msrb.mxu3 %v1104_v28 }
 0x46a   :  { %1207 = vmatpush.bf16.msrb.mxu3 %v1103_v63 }
 0x46d   :  { %1208 = vmatmul.bf16.vlgmr.msrb.gmra.mxu3 %v1776_v21  ;;  %1159 = vmatmul.bf16.gmra.mxu2 %v1822_v22 }
 0x470   :  { %v1120_v38 = vpop.f32.mrf.mxu2 }
 0x478   :  { %v1122_v21 = vpop.f32.mrf.mxu2 }
 0x47d   :  { %1213 = vmatmul.bf16.gmra.mxu3 %v1782_v27  ;;  %1164 = vmatmul.bf16.gmra.mxu2 %v1828_v42 }
 0x480   :  { %v1125_v27 = vpop.f32.mrf.mxu2 }
 0x48d   :  { %1218 = vmatmul.bf16.gmra.mxu3 %v1788_v33  ;;  %1169 = vmatmul.bf16.gmra.mxu2 %v1834_v60  ;;  %v1127_v33 = vpop.f32.mrf.mxu2 }
 0x495   :  { %v1130_v44 = vpop.f32.mrf.mxu2 }
 0x49d   :  { %1223 = vmatmul.bf16.gmra.mxu3 %v1794_v39  ;;  %1174 = vmatmul.bf16.gmra.mxu2 %v1840_v12  ;;  %v1132_v57 = vpop.f32.mrf.mxu2 }
 0x4a5   :  { %v1135_v5 = vpop.f32.mrf.mxu2 }
 0x4ad   :  { %1228 = vmatmul.bf16.gmra.mxu3 %v1800_v45  ;;  %1179 = vmatmul.bf16.gmra.mxu2 %v1846_v36 }
 0x4bd   :  { %1233 = vmatmul.bf16.gmra.mxu3 %v1806_v58  ;;  %1184 = vmatmul.bf16.gmra.mxu2 %v1852_v56 }
 0x4cd   :  { %1238 = vmatmul.bf16.gmra.mxu3 %v1812_v6  ;;  %1189 = vmatmul.bf16.gmra.mxu2 %v1858_v16 }
 0x4dd   :  { %1243 = vmatmul.bf16.gmra.mxu3 %v1818_v15  ;;  %v1137_v15 = vpop.f32.mrf.mxu2  ;;  %1194 = vmatmul.bf16.gmra.mxu2 %v1864_v46 }
 0x4ed   :  { %1248 = vmatmul.bf16.gmra.mxu3 %v1824_v23  ;;  %v1140_v23 = vpop.f32.mrf.mxu2 }
 0x4f0   :  { %v1209_v39 = vpop.f32.mrf.mxu3 }
 0x4f1   :  { %v1210_v45 = vadd.f32 %v1209_v39, %v1120_v38 }
 0x4f3   :  { %1289 = vst [vmem:[#allocation10] sm:$0xff] %v1210_v45 }
 0x4f5   :  { %v1142_v36 = vpop.f32.mrf.mxu2 }
 0x4f8   :  { %v1211_v58 = vpop.f32.mrf.mxu3 }
 0x4f9   :  { %v1212_v6 = vadd.f32 %v1211_v58, %v1122_v21 }
 0x4fb   :  { %1290 = vst [vmem:[#allocation10 + $0x8] sm:$0xff] %v1212_v6 }
 0x4fd   :  { %1253 = vmatmul.bf16.gmra.mxu3 %v1830_v43  ;;  %v1145_v55 = vpop.f32.mrf.mxu2 }
 0x500   :  { %v1214_v14 = vpop.f32.mrf.mxu3 }
 0x501   :  { %v1215_v22 = vadd.f32 %v1214_v14, %v1125_v27 }
 0x503   :  { %1291 = vst [vmem:[#allocation10 + $0x10] sm:$0xff] %v1215_v22 }
 0x505   :  { %v1147_v46 = vpop.f32.mrf.mxu2 }
 0x508   :  { %v1216_v42 = vpop.f32.mrf.mxu3 }
 0x509   :  { %v1217_v60 = vadd.f32 %v1216_v42, %v1127_v33 }
 0x50b   :  { %1292 = vst [vmem:[#allocation10 + $0x18] sm:$0xff] %v1217_v60 }
 0x50d   :  { %1258 = vmatmul.bf16.gmra.mxu3 %v1836_v61  ;;  %v1150_v19 = vpop.f32.mrf.mxu2 }
 0x510   :  { %v1219_v12 = vpop.f32.mrf.mxu3 }
 0x511   :  { %v1220_v56 = vadd.f32 %v1219_v12, %v1130_v44 }
 0x513   :  { %1293 = vst [vmem:[#allocation10 + $0x20] sm:$0xff] %v1220_v56 }
 0x515   :  { %v1152_v54 = vpop.f32.mrf.mxu2 }
 0x518   :  { %v1221_v16 = vpop.f32.mrf.mxu3 }
 0x519   :  { %v1222_v29 = vadd.f32 %v1221_v16, %v1132_v57 }
 0x51b   :  { %1294 = vst [vmem:[#allocation10 + $0x28] sm:$0xff] %v1222_v29 }
 0x51d   :  { %1263 = vmatmul.bf16.gmra.mxu3 %v1842_v13  ;;  %v1155_v13 = vpop.f32.mrf.mxu2 }
 0x520   :  { %v1224_v43 = vpop.f32.mrf.mxu3 }
 0x521   :  { %v1225_v53 = vadd.f32 %v1224_v43, %v1135_v5 }
 0x523   :  { %1295 = vst [vmem:[#allocation10 + $0x30] sm:$0xff] %v1225_v53 }
 0x525   :  { %v1157_v31 = vpop.f32.mrf.mxu2 }
 0x528   :  { %v1226_v41 = vpop.f32.mrf.mxu3 }
 0x529   :  { %v1227_v7 = vadd.f32 %v1226_v41, %v1137_v15 }
 0x52b   :  { %1296 = vst [vmem:[#allocation10 + $0x38] sm:$0xff] %v1227_v7 }
 0x52d   :  { %1268 = vmatmul.bf16.gmra.mxu3 %v1848_v37  ;;  %v1160_v28 = vpop.f32.mrf.mxu2 }
 0x530   :  { %v1229_v61 = vpop.f32.mrf.mxu3 }
 0x531   :  { %v1230_v51 = vadd.f32 %v1229_v61, %v1140_v23 }
 0x533   :  { %1297 = vst [vmem:[#allocation10 + $0x40] sm:$0xff] %v1230_v51 }
 0x535   :  { %v1162_v18 = vpop.f32.mrf.mxu2 }
 0x538   :  { %v1231_v24 = vpop.f32.mrf.mxu3 }
 0x539   :  { %v1232_v63 = vadd.f32 %v1231_v24, %v1142_v36 }
 0x53b   :  { %1298 = vst [vmem:[#allocation10 + $0x48] sm:$0xff] %v1232_v63 }
 0x53d   :  { %1273 = vmatmul.bf16.gmra.mxu3 %v1854_v59  ;;  %v1165_v4 = vpop.f32.mrf.mxu2 }
 0x540   :  { %v1234_v10 = vpop.f32.mrf.mxu3 }
 0x541   :  { %v1235_v9 = vadd.f32 %v1234_v10, %v1145_v55 }
 0x543   :  { %1299 = vst [vmem:[#allocation10 + $0x50] sm:$0xff] %v1235_v9 }
 0x545   :  { %v1167_v48 = vpop.f32.mrf.mxu2 }
 0x548   :  { %v1236_v8 = vpop.f32.mrf.mxu3 }
 0x549   :  { %v1237_v40 = vadd.f32 %v1236_v8, %v1147_v46 }
 0x54b   :  { %1300 = vst [vmem:[#allocation10 + $0x58] sm:$0xff] %v1237_v40 }
 0x54d   :  { %1278 = vmatmul.bf16.gmra.mxu3 %v1860_v17  ;;  %v1170_v20 = vpop.f32.mrf.mxu2 }
 0x550   :  { %v1239_v37 = vpop.f32.mrf.mxu3 }
 0x551   :  { %v1240_v2 = vadd.f32 %v1239_v37, %v1150_v19 }
 0x553   :  { %1301 = vst [vmem:[#allocation10 + $0x60] sm:$0xff] %v1240_v2 }
 0x555   :  { %v1172_v26 = vpop.f32.mrf.mxu2 }
 0x558   :  { %v1241_v0 = vpop.f32.mrf.mxu3 }
 0x559   :  { %v1242_v30 = vadd.f32 %v1241_v0, %v1152_v54 }
 0x55b   :  { %1302 = vst [vmem:[#allocation10 + $0x68] sm:$0xff] %v1242_v30 }
 0x55d   :  { %1283 = vmatmul.bf16.gmra.mxu3 %v1866_v47  ;;  %v1175_v32 = vpop.f32.mrf.mxu2 }
 0x560   :  { %v1244_v59 = vpop.f32.mrf.mxu3 }
 0x561   :  { %v1245_v50 = vadd.f32 %v1244_v59, %v1155_v13 }
 0x563   :  { %1303 = vst [vmem:[#allocation10 + $0x70] sm:$0xff] %v1245_v50 }
 0x565   :  { %v1177_v27 = vpop.f32.mrf.mxu2 }
 0x568   :  { %v1246_v1 = vpop.f32.mrf.mxu3 }
 0x569   :  { %v1247_v3 = vadd.f32 %v1246_v1, %v1157_v31 }
 0x56b   :  { %1304 = vst [vmem:[#allocation10 + $0x78] sm:$0xff] %v1247_v3 }
 0x56d   :  { %v1180_v57 = vpop.f32.mrf.mxu2 }
 0x570   :  { %v1249_v11 = vpop.f32.mrf.mxu3 }
 0x571   :  { %v1250_v17 = vadd.f32 %v1249_v11, %v1160_v28 }
 0x573   :  { %1305 = vst [vmem:[#allocation10 + $0x80] sm:$0xff] %v1250_v17 }
 0x575   :  { %v1182_v5 = vpop.f32.mrf.mxu2 }
 0x578   :  { %v1251_v52 = vpop.f32.mrf.mxu3 }
 0x579   :  { %v1252_v62 = vadd.f32 %v1251_v52, %v1162_v18 }
 0x57b   :  { %1306 = vst [vmem:[#allocation10 + $0x88] sm:$0xff] %v1252_v62 }
 0x57d   :  { %v1185_v15 = vpop.f32.mrf.mxu2 }
 0x580   :  { %v1254_v25 = vpop.f32.mrf.mxu3 }
 0x581   :  { %v1255_v34 = vadd.f32 %v1254_v25, %v1165_v4 }
 0x583   :  { %1307 = vst [vmem:[#allocation10 + $0x90] sm:$0xff] %v1255_v34 }
 0x585   :  { %v1187_v60 = vpop.f32.mrf.mxu2 }
 0x588   :  { %v1256_v47 = vpop.f32.mrf.mxu3 }
 0x589   :  { %v1257_v35 = vadd.f32 %v1256_v47, %v1167_v48 }
 0x58b   :  { %1308 = vst [vmem:[#allocation10 + $0x98] sm:$0xff] %v1257_v35 }
 0x58d   :  { %v1190_v16 = vpop.f32.mrf.mxu2 }
 0x590   :  { %v1259_v49 = vpop.f32.mrf.mxu3 }
 0x591   :  { %v1260_v38 = vadd.f32 %v1259_v49, %v1170_v20 }
 0x593   :  { %1309 = vst [vmem:[#allocation10 + $0xa0] sm:$0xff] %v1260_v38 }
 0x595   :  { %v1192_v43 = vpop.f32.mrf.mxu2 }
 0x598   :  { %v1261_v21 = vpop.f32.mrf.mxu3 }
 0x599   :  { %v1262_v33 = vadd.f32 %v1261_v21, %v1172_v26 }
 0x59b   :  { %1310 = vst [vmem:[#allocation10 + $0xa8] sm:$0xff] %v1262_v33 }
 0x59d   :  { %v1195_v41 = vpop.f32.mrf.mxu2 }
 0x5a0   :  { %v1264_v44 = vpop.f32.mrf.mxu3 }
 0x5a1   :  { %v1265_v39 = vadd.f32 %v1264_v44, %v1175_v32 }
 0x5a3   :  { %1311 = vst [vmem:[#allocation10 + $0xb0] sm:$0xff] %v1265_v39 }
 0x5a5   :  { %v1197_v61 = vpop.f32.mrf.mxu2 }
 0x5a8   :  { %v1266_v45 = vpop.f32.mrf.mxu3 }
 0x5a9   :  { %v1267_v58 = vadd.f32 %v1266_v45, %v1177_v27 }
 0x5ab   :  { %1312 = vst [vmem:[#allocation10 + $0xb8] sm:$0xff] %v1267_v58 }
 0x5b0   :  { %v1269_v6 = vpop.f32.mrf.mxu3 }
 0x5b1   :  { %v1270_v14 = vadd.f32 %v1269_v6, %v1180_v57 }
 0x5b3   :  { %1313 = vst [vmem:[#allocation10 + $0xc0] sm:$0xff] %v1270_v14 }
 0x5b8   :  { %v1271_v22 = vpop.f32.mrf.mxu3 }
 0x5b9   :  { %v1272_v42 = vadd.f32 %v1271_v22, %v1182_v5 }
 0x5bb   :  { %1314 = vst [vmem:[#allocation10 + $0xc8] sm:$0xff] %v1272_v42 }
 0x5c0   :  { %v1274_v23 = vpop.f32.mrf.mxu3 }
 0x5c1   :  { %v1275_v12 = vadd.f32 %v1274_v23, %v1185_v15 }
 0x5c3   :  { %1315 = vst [vmem:[#allocation10 + $0xd0] sm:$0xff] %v1275_v12 }
 0x5c8   :  { %v1276_v36 = vpop.f32.mrf.mxu3 }
 0x5c9   :  { %v1277_v56 = vadd.f32 %v1276_v36, %v1187_v60 }
 0x5cb   :  { %1316 = vst [vmem:[#allocation10 + $0xd8] sm:$0xff] %v1277_v56 }
 0x5d0   :  { %v1279_v55 = vpop.f32.mrf.mxu3 }
 0x5d1   :  { %v1280_v29 = vadd.f32 %v1279_v55, %v1190_v16 }
 0x5d3   :  { %1317 = vst [vmem:[#allocation10 + $0xe0] sm:$0xff] %v1280_v29 }
 0x5d8   :  { %v1281_v46 = vpop.f32.mrf.mxu3 }
 0x5d9   :  { %v1282_v53 = vadd.f32 %v1281_v46, %v1192_v43 }
 0x5db   :  { %1318 = vst [vmem:[#allocation10 + $0xe8] sm:$0xff] %v1282_v53 }
 0x5e0   :  { %v1284_v7 = vpop.f32.mrf.mxu3 }
 0x5e1   :  { %v1285_v19 = vadd.f32 %v1284_v7, %v1195_v41 }
 0x5e3   :  { %1319 = vst [vmem:[#allocation10 + $0xf0] sm:$0xff] %v1285_v19 }
 0x5e8   :  { %v1286_v51 = vpop.f32.mrf.mxu3 }
 0x5e9   :  { %v1287_v54 = vadd.f32 %v1286_v51, %v1197_v61 }
 0x5eb   :  { %1320 = vst [vmem:[#allocation10 + $0xf8] sm:$0xff] %v1287_v54 }
 0x5ec   :  { %1333 = dma.vmem_to_hbm [thread:$0]  %s1326_s3, 4096, %s1328_s13, [#allocation4], %s1723_s27, %s1723_s27, %s1724_s28  }
 0x5ed   :  { %1717 = dma.done.wait [#allocation4], 4096  }
 0x5ee   :  { %1718 = vsyncadd [#allocation4], 4294963200 }
 0x5ef   :  { %1338 = vsyncpa [#allocation3], 1 }
 0x5f0   :  { %1339 = vsyncpa [#allocation6], 1 }
 0x5f1   :  { %1340 = vsyncpa [#allocation9], 1 }
 0x5f2   :  { %1341 = vsyncpa [#allocation4], 1 }

// kernel: tpu_custom_call.1
= control target key start
LH: loop header
LB: loop body
LE: loop exit
PB: predicated region body
PF: predicated region fallthrough
CT: control target
= control target key end

     0   :  { %9 = vsyncpa [#allocation3], 0  ;;  %s1991_s0 = inlined_call_operand.hbm [shape: bf16[256,256], index: 0, kind: input, shape index: {}]   ;;  %s1992_s1 = inlined_call_operand.hbm [shape: bf16[256,128], index: 1, kind: input, shape index: {}]   ;;  %s1993_s2 = inlined_call_operand.hbm [shape: f32[128,128], index: 2, kind: input, shape index: {}]   ;;  %s1994_s3 = inlined_call_operand.hbm [shape: f32[128,128], index: 3, kind: input, shape index: {}]   ;;  %s1995_s4 = inlined_call_operand.hbm [shape: f32[256,128], index: 4, kind: output, shape index: {}]  }
   0x1   :  { %10 = vsyncpa [#allocation6], 0 }
   0x2   :  { %11 = vsyncpa [#allocation9], 0  ;;  %s30_s17 = sshll.u32 %s1992_s1, 4  ;;  %s31_s17 = int_to_ptr.hbm [resolvable:$true] %s30_s17 }
   0x3   :  { %12 = vsyncpa [#allocation4], 0  ;;  %s1719_s18 = smov [#allocation5]   ;;  %s17_s22 = sshll.u32 %s1991_s0, 4  ;;  %s18_s22 = int_to_ptr.hbm [resolvable:$true] %s17_s22 }
   0x4   :  { %s32_s19 = sshll.u32 %s1719_s18, 4  ;;  %s1720_s23 = smov 64   ;;  %s33_s19 = int_to_ptr.vmem [resolvable:$true] %s32_s19 }
   0x5   :  { %s1721_s24 = smov 4   ;;  %s1722_s25 = smov [#allocation2]  }
   0x6   :  { %38 = dma.hbm_to_vmem [thread:$0]  %s31_s17, 2048, %s33_s19, [#allocation6], %s1720_s23, %s1720_s23, %s1721_s24  }
   0x7   :  { %s19_s26 = sshll.u32 %s1722_s25, 4  ;;  %s1723_s27 = smov 128   ;;  %s20_s26 = int_to_ptr.vmem [resolvable:$true] %s19_s26 }
   0x8   :  { %s1724_s28 = smov 8   ;;  %s43_s30 = sshll.u32 %s1993_s2, 4  ;;  %s44_s30 = int_to_ptr.hbm [resolvable:$true] %s43_s30 }
   0x9   :  { %25 = dma.hbm_to_vmem [thread:$0]  %s18_s22, 4096, %s20_s26, [#allocation3], %s1723_s27, %s1723_s27, %s1724_s28  }
   0xa   :  { %s1725_s5 = smov [#allocation7]   ;;  %s56_s8 = sshll.u32 %s1994_s3, 4  ;;  %s57_s8 = int_to_ptr.hbm [resolvable:$true] %s56_s8 }
   0xb   :  { %s45_s0 = sshll.u32 %s1725_s5, 4  ;;  %s1726_s9 = smov [#allocation8]   ;;  %s46_s0 = int_to_ptr.vmem [resolvable:$true] %s45_s0 }
   0xc   :  { %51 = dma.hbm_to_vmem [thread:$0]  %s44_s30, 2048, %s46_s0, [#allocation6], %s1723_s27, %s1723_s27, %s1724_s28  }
   0xd   :  { %s58_s10 = sshll.u32 %s1726_s9, 4  ;;  %s59_s10 = int_to_ptr.vmem [resolvable:$true] %s58_s10 }
   0xe   :  { %64 = dma.hbm_to_vmem [thread:$0]  %s57_s8, 2048, %s59_s10, [#allocation9], %s1723_s27, %s1723_s27, %s1724_s28  }
   0xf   :  { %1711 = dma.done.wait [#allocation3], 4096  }
  0x10   :  { %1712 = vsyncadd [#allocation3], 4294963200 }
  0x11   :  { %1713 = dma.done.wait [#allocation6], 4096  }
  0x12   :  { %1714 = vsyncadd [#allocation6], 4294963200 }
  0x13   :  { %1715 = dma.done.wait [#allocation9], 2048  }
  0x14   :  { %1716 = vsyncadd [#allocation9], 4294965248  ;;  %v1573_v0 = vld [vmem:[#allocation5 + $0x38] sm:$0xff]  ;;  %v1572_v2 = vld [vmem:[#allocation5 + $0x30] sm:$0xff]  ;;  %s1727_s2 = smov [#allocation10]   ;;  %s1327_s13 = sshll.u32 %s1995_s4, 4  ;;  %s1328_s13 = int_to_ptr.hbm [resolvable:$true] %s1327_s13 }
  0x15   :  { %v1581_v1 = vld [vmem:[#allocation5 + $0x78] sm:$0xff]  ;;  %401 = vmatpush.bf16.msra.mxu0 %v1573_v0  ;;  %v1580_v3 = vld [vmem:[#allocation5 + $0x70] sm:$0xff]  ;;  %v1571_v4 = vld [vmem:[#allocation5 + $0x28] sm:$0xff]  ;;  %s1325_s3 = sshll.u32 %s1727_s2, 4  ;;  %s1326_s3 = int_to_ptr.vmem [resolvable:$true] %s1325_s3 }
  0x16   :  { %490 = vmatpush.bf16.msra.mxu1 %v1581_v1  ;;  %v1579_v5 = vld [vmem:[#allocation5 + $0x68] sm:$0xff]  ;;  %v1570_v6 = vld [vmem:[#allocation5 + $0x20] sm:$0xff]  ;;  %v1569_v8 = vld [vmem:[#allocation5 + $0x18] sm:$0xff] }
  0x17   :  { %v1578_v7 = vld [vmem:[#allocation5 + $0x60] sm:$0xff]  ;;  %v1577_v9 = vld [vmem:[#allocation5 + $0x58] sm:$0xff]  ;;  %v1568_v10 = vld [vmem:[#allocation5 + $0x10] sm:$0xff] }
  0x18   :  { %v1576_v11 = vld [vmem:[#allocation5 + $0x50] sm:$0xff]  ;;  %v1567_v12 = vld [vmem:[#allocation5 + $0x8] sm:$0xff]  ;;  %v1566_v14 = vld [vmem:[#allocation5] sm:$0xff] }
  0x19   :  { %402 = vmatpush.bf16.msra.mxu0 %v1572_v2  ;;  %v1575_v13 = vld [vmem:[#allocation5 + $0x48] sm:$0xff]  ;;  %v1574_v15 = vld [vmem:[#allocation5 + $0x40] sm:$0xff]  ;;  %v1352_v22 = vld [vmem:[#allocation2 + $0x10] sm:$0xf] }
  0x1a   :  { %491 = vmatpush.bf16.msra.mxu1 %v1580_v3  ;;  %v1344_v16 = vld [vmem:[#allocation2] sm:$0xf]  ;;  %v1535_v17 = vld [vmem:[#allocation2 + $0x4] sm:$0xf0]  ;;  %v1534_v18 = vld [vmem:[#allocation2 + $0x4] sm:$0xf] }
  0x1b   :  { %v1346_v19 = vld [vmem:[#allocation2 + $0x8] sm:$0xf0]  ;;  %v1774_v20 = vor.u32 %v1535_v17, %v1344_v16  ;;  %v1537_v23 = vld [vmem:[#allocation2 + $0x14] sm:$0xf0]  ;;  %v1536_v24 = vld [vmem:[#allocation2 + $0x14] sm:$0xf] }
  0x1c   :  { %v1776_v21 = vor.u32 %v1534_v18, %v1346_v19  ;;  %v1354_v25 = vld [vmem:[#allocation2 + $0x18] sm:$0xf0]  ;;  %v1780_v26 = vor.u32 %v1537_v23, %v1352_v22  ;;  %v1360_v28 = vld [vmem:[#allocation2 + $0x20] sm:$0xf]  ;;  %v1539_v29 = vld [vmem:[#allocation2 + $0x24] sm:$0xf0] }
  0x1d   :  { %403 = vmatpush.bf16.msra.mxu0 %v1571_v4  ;;  %v1782_v27 = vor.u32 %v1536_v24, %v1354_v25  ;;  %v1538_v30 = vld [vmem:[#allocation2 + $0x24] sm:$0xf]  ;;  %v1362_v31 = vld [vmem:[#allocation2 + $0x28] sm:$0xf0]  ;;  %v1786_v32 = vor.u32 %v1539_v29, %v1360_v28  ;;  %v1368_v34 = vld [vmem:[#allocation2 + $0x30] sm:$0xf] }
  0x1e   :  { %492 = vmatpush.bf16.msra.mxu1 %v1579_v5  ;;  %v1788_v33 = vor.u32 %v1538_v30, %v1362_v31  ;;  %v1541_v35 = vld [vmem:[#allocation2 + $0x34] sm:$0xf0]  ;;  %v1540_v36 = vld [vmem:[#allocation2 + $0x34] sm:$0xf]  ;;  %v1370_v37 = vld [vmem:[#allocation2 + $0x38] sm:$0xf0] }
  0x1f   :  { %v1792_v38 = vor.u32 %v1541_v35, %v1368_v34  ;;  %v1794_v39 = vor.u32 %v1540_v36, %v1370_v37  ;;  %v1376_v40 = vld [vmem:[#allocation2 + $0x40] sm:$0xf]  ;;  %v1543_v41 = vld [vmem:[#allocation2 + $0x44] sm:$0xf0]  ;;  %v1542_v42 = vld [vmem:[#allocation2 + $0x44] sm:$0xf] }
  0x20   :  { %v1378_v43 = vld [vmem:[#allocation2 + $0x48] sm:$0xf0]  ;;  %v1798_v44 = vor.u32 %v1543_v41, %v1376_v40  ;;  %v626_v46 = vld [vmem:[#allocation7 + $0x78] sm:$0xff]  ;;  %v625_v47 = vld [vmem:[#allocation7 + $0x70] sm:$0xff] }
  0x21   :  { %404 = vmatpush.bf16.msra.mxu0 %v1570_v6  ;;  %v1800_v45 = vor.u32 %v1542_v42, %v1378_v43  ;;  %627 = vmatpush.msra.mxu2 %v626_v46  ;;  %v624_v48 = vld [vmem:[#allocation7 + $0x68] sm:$0xff]  ;;  %v623_v49 = vld [vmem:[#allocation7 + $0x60] sm:$0xff]  ;;  %v622_v50 = vld [vmem:[#allocation7 + $0x58] sm:$0xff] }
  0x22   :  { %493 = vmatpush.bf16.msra.mxu1 %v1578_v7  ;;  %v1384_v51 = vld [vmem:[#allocation2 + $0x50] sm:$0xf]  ;;  %v1545_v53 = vld [vmem:[#allocation2 + $0x54] sm:$0xf0]  ;;  %v1544_v54 = vld [vmem:[#allocation2 + $0x54] sm:$0xf] }
  0x23   :  { %628 = vmatpush.msra.mxu2 %v625_v47  ;;  %v621_v52 = vld [vmem:[#allocation7 + $0x50] sm:$0xff]  ;;  %v1386_v55 = vld [vmem:[#allocation2 + $0x58] sm:$0xf0]  ;;  %v620_v56 = vld [vmem:[#allocation7 + $0x48] sm:$0xff]  ;;  %v1804_v57 = vor.u32 %v1545_v53, %v1384_v51 }
  0x24   :  { %v1806_v58 = vor.u32 %v1544_v54, %v1386_v55  ;;  %v619_v59 = vld [vmem:[#allocation7 + $0x40] sm:$0xff]  ;;  %v618_v60 = vld [vmem:[#allocation7 + $0x38] sm:$0xff]  ;;  %v617_v61 = vld [vmem:[#allocation7 + $0x30] sm:$0xff] }
  0x25   :  { %405 = vmatpush.bf16.msra.mxu0 %v1569_v8  ;;  %629 = vmatpush.msra.mxu2 %v624_v48  ;;  %v616_v62 = vld [vmem:[#allocation7 + $0x28] sm:$0xff]  ;;  %v615_v63 = vld [vmem:[#allocation7 + $0x20] sm:$0xff]  ;;  %v614_v1 = vld [vmem:[#allocation7 + $0x18] sm:$0xff] }
  0x26   :  { %494 = vmatpush.bf16.msra.mxu1 %v1577_v9  ;;  %v1392_v0 = vld [vmem:[#allocation2 + $0x60] sm:$0xf]  ;;  %v1547_v2 = vld [vmem:[#allocation2 + $0x64] sm:$0xf0]  ;;  %v1546_v3 = vld [vmem:[#allocation2 + $0x64] sm:$0xf] }
  0x27   :  { %630 = vmatpush.msra.mxu2 %v623_v49  ;;  %v1394_v4 = vld [vmem:[#allocation2 + $0x68] sm:$0xf0]  ;;  %v1810_v5 = vor.u32 %v1547_v2, %v1392_v0  ;;  %v613_v7 = vld [vmem:[#allocation7 + $0x10] sm:$0xff]  ;;  %v611_v9 = vld [vmem:[#allocation7] sm:$0xff] }
  0x28   :  { %v1812_v6 = vor.u32 %v1546_v3, %v1394_v4  ;;  %v612_v8 = vld [vmem:[#allocation7 + $0x8] sm:$0xff]  ;;  %v1408_v16 = vld [vmem:[#allocation2 + $0x80] sm:$0xf]  ;;  %v1550_v18 = vld [vmem:[#allocation2 + $0x84] sm:$0xf] }
  0x29   :  { %406 = vmatpush.bf16.msra.mxu0 %v1568_v10  ;;  %631 = vmatpush.msra.mxu2 %v622_v50  ;;  %v1400_v10 = vld [vmem:[#allocation2 + $0x70] sm:$0xf]  ;;  %v1551_v17 = vld [vmem:[#allocation2 + $0x84] sm:$0xf0]  ;;  %v1410_v19 = vld [vmem:[#allocation2 + $0x88] sm:$0xf0] }
  0x2a   :  { %495 = vmatpush.bf16.msra.mxu1 %v1576_v11  ;;  %v1549_v11 = vld [vmem:[#allocation2 + $0x74] sm:$0xf0]  ;;  %v1822_v22 = vor.u32 %v1551_v17, %v1408_v16  ;;  %v1824_v23 = vor.u32 %v1550_v18, %v1410_v19  ;;  %v1416_v36 = vld [vmem:[#allocation2 + $0x90] sm:$0xf]  ;;  %v1552_v40 = vld [vmem:[#allocation2 + $0x94] sm:$0xf] }
  0x2b   :  { %632 = vmatpush.msra.mxu2 %v621_v52  ;;  %v1553_v37 = vld [vmem:[#allocation2 + $0x94] sm:$0xf0]  ;;  %v1418_v41 = vld [vmem:[#allocation2 + $0x98] sm:$0xf0]  ;;  %v1424_v54 = vld [vmem:[#allocation2 + $0xa0] sm:$0xf] }
  0x2c   :  { %v1828_v42 = vor.u32 %v1553_v37, %v1416_v36  ;;  %v1830_v43 = vor.u32 %v1552_v40, %v1418_v41  ;;  %v1555_v55 = vld [vmem:[#allocation2 + $0xa4] sm:$0xf0] }
  0x2d   :  { %407 = vmatpush.bf16.msra.mxu0 %v1567_v12  ;;  %633 = vmatpush.msra.mxu2 %v620_v56  ;;  %v1548_v12 = vld [vmem:[#allocation2 + $0x74] sm:$0xf]  ;;  %v1554_v56 = vld [vmem:[#allocation2 + $0xa4] sm:$0xf] }
  0x2e   :  { %496 = vmatpush.bf16.msra.mxu1 %v1575_v13  ;;  %v1402_v13 = vld [vmem:[#allocation2 + $0x78] sm:$0xf0] }
  0x2f   :  { %634 = vmatpush.msra.mxu2 %v619_v59  ;;  %v1426_v59 = vld [vmem:[#allocation2 + $0xa8] sm:$0xf0] }
  0x31   :  { %408 = vmatpush.bf16.msra.mxu0 %v1566_v14  ;;  %635 = vmatpush.msra.mxu2 %v618_v60  ;;  %v1816_v14 = vor.u32 %v1549_v11, %v1400_v10  ;;  %v1834_v60 = vor.u32 %v1555_v55, %v1424_v54  ;;  %v1556_v10 = vld [vmem:[#allocation2 + $0xb4] sm:$0xf]  ;;  %v1434_v11 = vld [vmem:[#allocation2 + $0xb8] sm:$0xf0] }
  0x32   :  { %497 = vmatpush.bf16.msra.mxu1 %v1574_v15  ;;  %v1818_v15 = vor.u32 %v1548_v12, %v1402_v13  ;;  %v1842_v13 = vor.u32 %v1556_v10, %v1434_v11  ;;  %v1560_v54 = vld [vmem:[#allocation2 + $0xd4] sm:$0xf]  ;;  %v1450_v55 = vld [vmem:[#allocation2 + $0xd8] sm:$0xf0]  ;;  %v1562_v10 = vld [vmem:[#allocation2 + $0xe4] sm:$0xf] }
  0x33   :  { %636 = vmatpush.msra.mxu2 %v617_v61  ;;  %v1836_v61 = vor.u32 %v1554_v56, %v1426_v59  ;;  %v1854_v59 = vor.u32 %v1560_v54, %v1450_v55  ;;  %v1458_v11 = vld [vmem:[#allocation2 + $0xe8] sm:$0xf0] }
  0x34   :  { %409 = vmatmul.bf16.vlgmr.msra.gmra.mxu0 %v1774_v20 }
  0x35   :  { %498 = vmatmul.bf16.vlgmr.msra.gmra.mxu1 %v1776_v21  ;;  %637 = vmatpush.msra.mxu2 %v616_v62 }
  0x37   :  { %638 = vmatpush.msra.mxu2 %v615_v63 }
  0x39   :  { %639 = vmatpush.msra.mxu2 %v614_v1 }
  0x3b   :  { %640 = vmatpush.msra.mxu2 %v613_v7 }
  0x3d   :  { %641 = vmatpush.msra.mxu2 %v612_v8  ;;  %v1432_v8 = vld [vmem:[#allocation2 + $0xb0] sm:$0xf] }
  0x3f   :  { %642 = vmatpush.msra.mxu2 %v611_v9  ;;  %v1557_v9 = vld [vmem:[#allocation2 + $0xb4] sm:$0xf0] }
  0x40   :  { %v1840_v12 = vor.u32 %v1557_v9, %v1432_v8  ;;  %v1456_v8 = vld [vmem:[#allocation2 + $0xe0] sm:$0xf]  ;;  %v1563_v9 = vld [vmem:[#allocation2 + $0xe4] sm:$0xf0] }
  0x44   :  { %414 = vmatmul.bf16.gmra.mxu0 %v1780_v26 }
  0x45   :  { %503 = vmatmul.bf16.gmra.mxu1 %v1782_v27 }
  0x54   :  { %419 = vmatmul.bf16.gmra.mxu0 %v1786_v32 }
  0x55   :  { %508 = vmatmul.bf16.gmra.mxu1 %v1788_v33 }
  0x64   :  { %424 = vmatmul.bf16.gmra.mxu0 %v1792_v38 }
  0x65   :  { %513 = vmatmul.bf16.gmra.mxu1 %v1794_v39 }
  0x74   :  { %429 = vmatmul.bf16.gmra.mxu0 %v1798_v44 }
  0x75   :  { %518 = vmatmul.bf16.gmra.mxu1 %v1800_v45 }
  0x84   :  { %434 = vmatmul.bf16.gmra.mxu0 %v1804_v57 }
  0x85   :  { %523 = vmatmul.bf16.gmra.mxu1 %v1806_v58 }
  0x94   :  { %439 = vmatmul.bf16.gmra.mxu0 %v1810_v5 }
  0x95   :  { %528 = vmatmul.bf16.gmra.mxu1 %v1812_v6 }
  0xa4   :  { %444 = vmatmul.bf16.gmra.mxu0 %v1816_v14 }
  0xa5   :  { %533 = vmatmul.bf16.gmra.mxu1 %v1818_v15 }
  0xb1   :  { %v410_v24 = vpop.f32.mrf.mxu0 }
  0xb2   :  { %v499_v25 = vpop.f32.mrf.mxu1 }
  0xb3   :  { %v500_v28 = vadd.f32 %v499_v25, %v410_v24 }
  0xb4   :  { %449 = vmatmul.bf16.gmra.mxu0 %v1822_v22 }
  0xb5   :  { %v579_v29 = vmax.f32 %v500_v28, 0.0  ;;  %538 = vmatmul.bf16.gmra.mxu1 %v1824_v23 }
  0xb7   :  { %643 = vmatmul.f32.vlgmr.msra.gmra.mxu2 %v579_v29 }
  0xb9   :  { %v412_v30 = vpop.f32.mrf.mxu0 }
  0xba   :  { %v501_v31 = vpop.f32.mrf.mxu1 }
  0xbb   :  { %v502_v34 = vadd.f32 %v501_v31, %v412_v30  ;;  %v1440_v30 = vld [vmem:[#allocation2 + $0xc0] sm:$0xf]  ;;  %v1559_v31 = vld [vmem:[#allocation2 + $0xc4] sm:$0xf0] }
  0xbc   :  { %v1846_v36 = vor.u32 %v1559_v31, %v1440_v30 }
  0xbd   :  { %v580_v35 = vmax.f32 %v502_v34, 0.0  ;;  %v1558_v34 = vld [vmem:[#allocation2 + $0xc4] sm:$0xf] }
  0xbf   :  { %646 = vmatmul.f32.gmra.mxu2 %v580_v35  ;;  %v1442_v35 = vld [vmem:[#allocation2 + $0xc8] sm:$0xf0] }
  0xc0   :  { %v1848_v37 = vor.u32 %v1558_v34, %v1442_v35  ;;  %v1464_v34 = vld [vmem:[#allocation2 + $0xf0] sm:$0xf]  ;;  %v1565_v35 = vld [vmem:[#allocation2 + $0xf4] sm:$0xf0] }
  0xc1   :  { %v415_v46 = vpop.f32.mrf.mxu0 }
  0xc2   :  { %v504_v47 = vpop.f32.mrf.mxu1 }
  0xc3   :  { %v505_v48 = vadd.f32 %v504_v47, %v415_v46 }
  0xc4   :  { %454 = vmatmul.bf16.gmra.mxu0 %v1828_v42 }
  0xc5   :  { %v581_v49 = vmax.f32 %v505_v48, 0.0  ;;  %543 = vmatmul.bf16.gmra.mxu1 %v1830_v43 }
  0xc7   :  { %649 = vmatmul.f32.gmra.mxu2 %v581_v49 }
  0xc9   :  { %v417_v50 = vpop.f32.mrf.mxu0 }
  0xca   :  { %v506_v51 = vpop.f32.mrf.mxu1 }
  0xcb   :  { %v507_v52 = vadd.f32 %v506_v51, %v417_v50 }
  0xcd   :  { %v582_v53 = vmax.f32 %v507_v52, 0.0  ;;  %v1448_v52 = vld [vmem:[#allocation2 + $0xd0] sm:$0xf] }
  0xcf   :  { %652 = vmatmul.f32.gmra.mxu2 %v582_v53  ;;  %v1561_v53 = vld [vmem:[#allocation2 + $0xd4] sm:$0xf0] }
  0xd0   :  { %v1852_v56 = vor.u32 %v1561_v53, %v1448_v52 }
  0xd1   :  { %v420_v62 = vpop.f32.mrf.mxu0 }
  0xd2   :  { %v509_v63 = vpop.f32.mrf.mxu1 }
  0xd3   :  { %v510_v0 = vadd.f32 %v509_v63, %v420_v62 }
  0xd4   :  { %459 = vmatmul.bf16.gmra.mxu0 %v1834_v60 }
  0xd5   :  { %v583_v1 = vmax.f32 %v510_v0, 0.0  ;;  %548 = vmatmul.bf16.gmra.mxu1 %v1836_v61 }
  0xd7   :  { %655 = vmatmul.f32.gmra.mxu2 %v583_v1 }
  0xd9   :  { %v422_v2 = vpop.f32.mrf.mxu0 }
  0xda   :  { %v511_v3 = vpop.f32.mrf.mxu1 }
  0xdb   :  { %v512_v4 = vadd.f32 %v511_v3, %v422_v2 }
  0xdd   :  { %v584_v7 = vmax.f32 %v512_v4, 0.0 }
  0xdf   :  { %658 = vmatmul.f32.gmra.mxu2 %v584_v7 }
  0xe1   :  { %v425_v16 = vpop.f32.mrf.mxu0 }
  0xe2   :  { %v514_v17 = vpop.f32.mrf.mxu1 }
  0xe3   :  { %v515_v18 = vadd.f32 %v514_v17, %v425_v16  ;;  %v1858_v16 = vor.u32 %v1563_v9, %v1456_v8  ;;  %v1860_v17 = vor.u32 %v1562_v10, %v1458_v11 }
  0xe4   :  { %464 = vmatmul.bf16.gmra.mxu0 %v1840_v12 }
  0xe5   :  { %v585_v19 = vmax.f32 %v515_v18, 0.0  ;;  %553 = vmatmul.bf16.gmra.mxu1 %v1842_v13 }
  0xe7   :  { %661 = vmatmul.f32.gmra.mxu2 %v585_v19 }
  0xe9   :  { %v427_v24 = vpop.f32.mrf.mxu0 }
  0xea   :  { %v516_v25 = vpop.f32.mrf.mxu1 }
  0xeb   :  { %v517_v28 = vadd.f32 %v516_v25, %v427_v24 }
  0xed   :  { %v586_v29 = vmax.f32 %v517_v28, 0.0 }
  0xef   :  { %664 = vmatmul.f32.gmra.mxu2 %v586_v29 }
  0xf1   :  { %v430_v40 = vpop.f32.mrf.mxu0 }
  0xf2   :  { %v519_v41 = vpop.f32.mrf.mxu1 }
  0xf3   :  { %v520_v46 = vadd.f32 %v519_v41, %v430_v40  ;;  %v1564_v40 = vld [vmem:[#allocation2 + $0xf4] sm:$0xf]  ;;  %v1466_v41 = vld [vmem:[#allocation2 + $0xf8] sm:$0xf0] }
  0xf4   :  { %469 = vmatmul.bf16.gmra.mxu0 %v1846_v36 }
  0xf5   :  { %558 = vmatmul.bf16.gmra.mxu1 %v1848_v37  ;;  %v587_v47 = vmax.f32 %v520_v46, 0.0  ;;  %v1864_v46 = vor.u32 %v1565_v35, %v1464_v34 }
  0xf7   :  { %667 = vmatmul.f32.gmra.mxu2 %v587_v47  ;;  %v1866_v47 = vor.u32 %v1564_v40, %v1466_v41 }
  0xf9   :  { %v432_v48 = vpop.f32.mrf.mxu0 }
  0xfa   :  { %v521_v49 = vpop.f32.mrf.mxu1 }
  0xfb   :  { %v522_v50 = vadd.f32 %v521_v49, %v432_v48 }
  0xfd   :  { %v588_v51 = vmax.f32 %v522_v50, 0.0 }
  0xff   :  { %670 = vmatmul.f32.gmra.mxu2 %v588_v51 }
 0x101   :  { %v435_v62 = vpop.f32.mrf.mxu0 }
 0x102   :  { %v524_v63 = vpop.f32.mrf.mxu1 }
 0x103   :  { %v525_v0 = vadd.f32 %v524_v63, %v435_v62 }
 0x104   :  { %474 = vmatmul.bf16.gmra.mxu0 %v1852_v56 }
 0x105   :  { %563 = vmatmul.bf16.gmra.mxu1 %v1854_v59  ;;  %v589_v1 = vmax.f32 %v525_v0, 0.0 }
 0x107   :  { %673 = vmatmul.f32.gmra.mxu2 %v589_v1 }
 0x109   :  { %v437_v2 = vpop.f32.mrf.mxu0 }
 0x10a   :  { %v526_v3 = vpop.f32.mrf.mxu1 }
 0x10b   :  { %v527_v4 = vadd.f32 %v526_v3, %v437_v2 }
 0x10d   :  { %v590_v7 = vmax.f32 %v527_v4, 0.0 }
 0x10f   :  { %676 = vmatmul.f32.gmra.mxu2 %v590_v7 }
 0x111   :  { %v440_v18 = vpop.f32.mrf.mxu0 }
 0x112   :  { %v529_v19 = vpop.f32.mrf.mxu1 }
 0x113   :  { %v530_v24 = vadd.f32 %v529_v19, %v440_v18 }
 0x114   :  { %479 = vmatmul.bf16.gmra.mxu0 %v1858_v16 }
 0x115   :  { %568 = vmatmul.bf16.gmra.mxu1 %v1860_v17  ;;  %v591_v25 = vmax.f32 %v530_v24, 0.0 }
 0x117   :  { %679 = vmatmul.f32.gmra.mxu2 %v591_v25 }
 0x119   :  { %v442_v28 = vpop.f32.mrf.mxu0 }
 0x11a   :  { %v531_v29 = vpop.f32.mrf.mxu1 }
 0x11b   :  { %v532_v30 = vadd.f32 %v531_v29, %v442_v28 }
 0x11d   :  { %v592_v31 = vmax.f32 %v532_v30, 0.0 }
 0x11f   :  { %682 = vmatmul.f32.gmra.mxu2 %v592_v31 }
 0x121   :  { %v445_v48 = vpop.f32.mrf.mxu0 }
 0x122   :  { %v534_v49 = vpop.f32.mrf.mxu1 }
 0x123   :  { %v535_v50 = vadd.f32 %v534_v49, %v445_v48 }
 0x124   :  { %484 = vmatmul.bf16.gmra.mxu0 %v1864_v46 }
 0x125   :  { %573 = vmatmul.bf16.gmra.mxu1 %v1866_v47  ;;  %v593_v51 = vmax.f32 %v535_v50, 0.0 }
 0x127   :  { %685 = vmatmul.f32.gmra.mxu2 %v593_v51 }
 0x129   :  { %v447_v52 = vpop.f32.mrf.mxu0 }
 0x12a   :  { %v536_v53 = vpop.f32.mrf.mxu1 }
 0x12b   :  { %v537_v54 = vadd.f32 %v536_v53, %v447_v52 }
 0x12d   :  { %v594_v55 = vmax.f32 %v537_v54, 0.0 }
 0x12f   :  { %688 = vmatmul.f32.gmra.mxu2 %v594_v55 }
 0x131   :  { %v450_v62 = vpop.f32.mrf.mxu0 }
 0x132   :  { %v539_v63 = vpop.f32.mrf.mxu1 }
 0x133   :  { %v540_v0 = vadd.f32 %v539_v63, %v450_v62 }
 0x135   :  { %v595_v1 = vmax.f32 %v540_v0, 0.0 }
 0x137   :  { %691 = vmatmul.f32.gmra.mxu2 %v595_v1 }
 0x139   :  { %v452_v2 = vpop.f32.mrf.mxu0 }
 0x13a   :  { %v541_v3 = vpop.f32.mrf.mxu1  ;;  %v1870_v7 = vpop.f32.mrf.mxu2 }
 0x13b   :  { %v542_v4 = vadd.f32 %v541_v3, %v452_v2 }
 0x13d   :  { %v596_v8 = vmax.f32 %v542_v4, 0.0 }
 0x13f   :  { %694 = vmatmul.f32.gmra.mxu2 %v596_v8 }
 0x141   :  { %v455_v9 = vpop.f32.mrf.mxu0 }
 0x142   :  { %v544_v10 = vpop.f32.mrf.mxu1  ;;  %v1872_v18 = vpop.f32.mrf.mxu2 }
 0x143   :  { %v545_v11 = vadd.f32 %v544_v10, %v455_v9  ;;  %v740_v19 = vpack.c.bf16 %v1872_v18, %v1870_v7 }
 0x145   :  { %v597_v24 = vmax.f32 %v545_v11, 0.0 }
 0x147   :  { %697 = vmatmul.f32.gmra.mxu2 %v597_v24 }
 0x149   :  { %v457_v25 = vpop.f32.mrf.mxu0 }
 0x14a   :  { %v546_v28 = vpop.f32.mrf.mxu1  ;;  %v1876_v30 = vpop.f32.mrf.mxu2 }
 0x14b   :  { %v547_v29 = vadd.f32 %v546_v28, %v457_v25 }
 0x14d   :  { %v598_v31 = vmax.f32 %v547_v29, 0.0 }
 0x14f   :  { %700 = vmatmul.f32.gmra.mxu2 %v598_v31 }
 0x151   :  { %v460_v34 = vpop.f32.mrf.mxu0 }
 0x152   :  { %v549_v35 = vpop.f32.mrf.mxu1  ;;  %v1878_v41 = vpop.f32.mrf.mxu2 }
 0x153   :  { %v550_v40 = vadd.f32 %v549_v35, %v460_v34  ;;  %v741_v48 = vpack.c.bf16 %v1878_v41, %v1876_v30 }
 0x155   :  { %v599_v49 = vmax.f32 %v550_v40, 0.0 }
 0x157   :  { %703 = vmatmul.f32.gmra.mxu2 %v599_v49 }
 0x159   :  { %v462_v50 = vpop.f32.mrf.mxu0 }
 0x15a   :  { %v551_v51 = vpop.f32.mrf.mxu1  ;;  %v1882_v53 = vpop.f32.mrf.mxu2 }
 0x15b   :  { %v552_v52 = vadd.f32 %v551_v51, %v462_v50 }
 0x15d   :  { %v600_v54 = vmax.f32 %v552_v52, 0.0 }
 0x15f   :  { %706 = vmatmul.f32.gmra.mxu2 %v600_v54 }
 0x161   :  { %v465_v55 = vpop.f32.mrf.mxu0 }
 0x162   :  { %v554_v62 = vpop.f32.mrf.mxu1  ;;  %v1884_v0 = vpop.f32.mrf.mxu2 }
 0x163   :  { %v555_v63 = vadd.f32 %v554_v62, %v465_v55  ;;  %v742_v1 = vpack.c.bf16 %v1884_v0, %v1882_v53 }
 0x165   :  { %v601_v2 = vmax.f32 %v555_v63, 0.0 }
 0x167   :  { %709 = vmatmul.f32.gmra.mxu2 %v601_v2 }
 0x169   :  { %v467_v3 = vpop.f32.mrf.mxu0 }
 0x16a   :  { %v556_v4 = vpop.f32.mrf.mxu1  ;;  %v1888_v9 = vpop.f32.mrf.mxu2 }
 0x16b   :  { %v557_v8 = vadd.f32 %v556_v4, %v467_v3 }
 0x16d   :  { %v602_v10 = vmax.f32 %v557_v8, 0.0 }
 0x16f   :  { %712 = vmatmul.f32.gmra.mxu2 %v602_v10 }
 0x171   :  { %v470_v11 = vpop.f32.mrf.mxu0 }
 0x172   :  { %v559_v24 = vpop.f32.mrf.mxu1  ;;  %v665_v28 = vpop.f32.mrf.mxu2 }
 0x173   :  { %v560_v25 = vadd.f32 %v559_v24, %v470_v11  ;;  %v743_v29 = vpack.c.bf16 %v665_v28, %v1888_v9 }
 0x175   :  { %v603_v31 = vmax.f32 %v560_v25, 0.0 }
 0x177   :  { %715 = vmatmul.f32.gmra.mxu2 %v603_v31 }
 0x179   :  { %v472_v34 = vpop.f32.mrf.mxu0 }
 0x17a   :  { %v561_v35 = vpop.f32.mrf.mxu1  ;;  %v668_v49 = vpop.f32.mrf.mxu2 }
 0x17b   :  { %v562_v40 = vadd.f32 %v561_v35, %v472_v34 }
 0x17d   :  { %v604_v50 = vmax.f32 %v562_v40, 0.0 }
 0x17f   :  { %718 = vmatmul.f32.gmra.mxu2 %v604_v50 }
 0x181   :  { %v475_v51 = vpop.f32.mrf.mxu0 }
 0x182   :  { %v564_v52 = vpop.f32.mrf.mxu1  ;;  %v671_v55 = vpop.f32.mrf.mxu2 }
 0x183   :  { %v565_v54 = vadd.f32 %v564_v52, %v475_v51 }
 0x185   :  { %v605_v62 = vmax.f32 %v565_v54, 0.0 }
 0x187   :  { %721 = vmatmul.f32.gmra.mxu2 %v605_v62 }
 0x189   :  { %v477_v63 = vpop.f32.mrf.mxu0 }
 0x18a   :  { %v566_v2 = vpop.f32.mrf.mxu1  ;;  %v674_v4 = vpop.f32.mrf.mxu2 }
 0x18b   :  { %v567_v3 = vadd.f32 %v566_v2, %v477_v63 }
 0x18d   :  { %v606_v8 = vmax.f32 %v567_v3, 0.0 }
 0x18f   :  { %724 = vmatmul.f32.gmra.mxu2 %v606_v8 }
 0x191   :  { %v480_v9 = vpop.f32.mrf.mxu0 }
 0x192   :  { %v569_v10 = vpop.f32.mrf.mxu1  ;;  %v677_v24 = vpop.f32.mrf.mxu2 }
 0x193   :  { %v570_v11 = vadd.f32 %v569_v10, %v480_v9 }
 0x195   :  { %v607_v25 = vmax.f32 %v570_v11, 0.0 }
 0x197   :  { %727 = vmatmul.f32.gmra.mxu2 %v607_v25 }
 0x199   :  { %v482_v28 = vpop.f32.mrf.mxu0 }
 0x19a   :  { %v571_v31 = vpop.f32.mrf.mxu1  ;;  %v680_v35 = vpop.f32.mrf.mxu2 }
 0x19b   :  { %v572_v34 = vadd.f32 %v571_v31, %v482_v28  ;;  %v745_v31 = vpack.c.bf16 %v677_v24, %v674_v4 }
 0x19d   :  { %v608_v40 = vmax.f32 %v572_v34, 0.0  ;;  %v744_v34 = vpack.c.bf16 %v671_v55, %v668_v49 }
 0x19f   :  { %730 = vmatmul.f32.gmra.mxu2 %v608_v40 }
 0x1a1   :  { %v485_v50 = vpop.f32.mrf.mxu0 }
 0x1a2   :  { %v574_v51 = vpop.f32.mrf.mxu1  ;;  %v683_v54 = vpop.f32.mrf.mxu2 }
 0x1a3   :  { %v575_v52 = vadd.f32 %v574_v51, %v485_v50  ;;  %v746_v25 = vpack.c.bf16 %v683_v54, %v680_v35 }
 0x1a5   :  { %v609_v62 = vmax.f32 %v575_v52, 0.0 }
 0x1a7   :  { %733 = vmatmul.f32.gmra.mxu2 %v609_v62 }
 0x1a9   :  { %v487_v63 = vpop.f32.mrf.mxu0 }
 0x1aa   :  { %v576_v2 = vpop.f32.mrf.mxu1  ;;  %v686_v8 = vpop.f32.mrf.mxu2 }
 0x1ab   :  { %v577_v3 = vadd.f32 %v576_v2, %v487_v63 }
 0x1ad   :  { %v610_v9 = vmax.f32 %v577_v3, 0.0  ;;  %v981_v3 = vld [vmem:[#allocation8 + $0x78] sm:$0xff] }
 0x1ae   :  { %982 = vmatpush.msrb.mxu1 %v981_v3 }
 0x1af   :  { %736 = vmatmul.f32.gmra.mxu2 %v610_v9  ;;  %v979_v9 = vld [vmem:[#allocation8 + $0x68] sm:$0xff] }
 0x1b2   :  { %v689_v10 = vpop.f32.mrf.mxu2 }
 0x1b3   :  { %v747_v11 = vpack.c.bf16 %v689_v10, %v686_v8  ;;  %v980_v8 = vld [vmem:[#allocation8 + $0x70] sm:$0xff]  ;;  %v978_v10 = vld [vmem:[#allocation8 + $0x60] sm:$0xff] }
 0x1b4   :  { %983 = vmatpush.msrb.mxu1 %v980_v8 }
 0x1b5   :  { %756 = vmatpush.bf16.msra.mxu3 %v747_v11  ;;  %v977_v11 = vld [vmem:[#allocation8 + $0x58] sm:$0xff] }
 0x1b6   :  { %984 = vmatpush.msrb.mxu1 %v979_v9 }
 0x1b8   :  { %985 = vmatpush.msrb.mxu1 %v978_v10 }
 0x1b9   :  { %757 = vmatpush.bf16.msra.mxu3 %v746_v25  ;;  %v976_v25 = vld [vmem:[#allocation8 + $0x50] sm:$0xff] }
 0x1ba   :  { %v692_v28 = vpop.f32.mrf.mxu2  ;;  %986 = vmatpush.msrb.mxu1 %v977_v11 }
 0x1bc   :  { %987 = vmatpush.msrb.mxu1 %v976_v25 }
 0x1bd   :  { %758 = vmatpush.bf16.msra.mxu3 %v745_v31  ;;  %v974_v31 = vld [vmem:[#allocation8 + $0x40] sm:$0xff] }
 0x1c1   :  { %759 = vmatpush.bf16.msra.mxu3 %v744_v34  ;;  %v973_v34 = vld [vmem:[#allocation8 + $0x38] sm:$0xff] }
 0x1c2   :  { %v695_v40 = vpop.f32.mrf.mxu2 }
 0x1c3   :  { %v748_v2 = vpack.c.bf16 %v695_v40, %v692_v28  ;;  %v975_v28 = vld [vmem:[#allocation8 + $0x48] sm:$0xff] }
 0x1c4   :  { %988 = vmatpush.msrb.mxu1 %v975_v28 }
 0x1c5   :  { %760 = vmatpush.bf16.msra.mxu3 %v743_v29 }
 0x1c6   :  { %989 = vmatpush.msrb.mxu1 %v974_v31 }
 0x1c8   :  { %990 = vmatpush.msrb.mxu1 %v973_v34 }
 0x1c9   :  { %761 = vmatpush.bf16.msra.mxu3 %v742_v1 }
 0x1ca   :  { %v698_v50 = vpop.f32.mrf.mxu2 }
 0x1cd   :  { %762 = vmatpush.bf16.msra.mxu3 %v741_v48 }
 0x1d1   :  { %763 = vmatpush.bf16.msra.mxu3 %v740_v19 }
 0x1d2   :  { %v701_v35 = vpop.f32.mrf.mxu2 }
 0x1d3   :  { %v749_v63 = vpack.c.bf16 %v701_v35, %v698_v50  ;;  %v972_v50 = vld [vmem:[#allocation8 + $0x30] sm:$0xff]  ;;  %v971_v35 = vld [vmem:[#allocation8 + $0x28] sm:$0xff] }
 0x1d4   :  { %764 = vmatmul.bf16.vlgmr.msra.gmra.mxu3 %v1774_v20  ;;  %991 = vmatpush.msrb.mxu1 %v972_v50 }
 0x1d6   :  { %992 = vmatpush.msrb.mxu1 %v971_v35 }
 0x1da   :  { %v704_v49 = vpop.f32.mrf.mxu2 }
 0x1e2   :  { %v707_v55 = vpop.f32.mrf.mxu2 }
 0x1e3   :  { %v750_v62 = vpack.c.bf16 %v707_v55, %v704_v49  ;;  %v970_v49 = vld [vmem:[#allocation8 + $0x20] sm:$0xff]  ;;  %v969_v55 = vld [vmem:[#allocation8 + $0x18] sm:$0xff] }
 0x1e4   :  { %769 = vmatmul.bf16.gmra.mxu3 %v1780_v26  ;;  %993 = vmatpush.msrb.mxu1 %v970_v49 }
 0x1e6   :  { %994 = vmatpush.msrb.mxu1 %v969_v55 }
 0x1ea   :  { %v710_v29 = vpop.f32.mrf.mxu2 }
 0x1f2   :  { %v713_v4 = vpop.f32.mrf.mxu2 }
 0x1f3   :  { %v751_v54 = vpack.c.bf16 %v713_v4, %v710_v29  ;;  %v968_v4 = vld [vmem:[#allocation8 + $0x10] sm:$0xff] }
 0x1f4   :  { %774 = vmatmul.bf16.gmra.mxu3 %v1786_v32  ;;  %995 = vmatpush.msrb.mxu1 %v968_v4 }
 0x1fa   :  { %v716_v53 = vpop.f32.mrf.mxu2 }
 0x202   :  { %v719_v0 = vpop.f32.mrf.mxu2 }
 0x203   :  { %v752_v52 = vpack.c.bf16 %v719_v0, %v716_v53  ;;  %v967_v53 = vld [vmem:[#allocation8 + $0x8] sm:$0xff]  ;;  %v966_v0 = vld [vmem:[#allocation8] sm:$0xff] }
 0x204   :  { %779 = vmatmul.bf16.gmra.mxu3 %v1792_v38  ;;  %996 = vmatpush.msrb.mxu1 %v967_v53 }
 0x206   :  { %997 = vmatpush.msrb.mxu1 %v966_v0 }
 0x20a   :  { %v722_v30 = vpop.f32.mrf.mxu2 }
 0x212   :  { %v725_v41 = vpop.f32.mrf.mxu2 }
 0x213   :  { %v753_v51 = vpack.c.bf16 %v725_v41, %v722_v30 }
 0x214   :  { %784 = vmatmul.bf16.gmra.mxu3 %v1798_v44 }
 0x21a   :  { %v728_v7 = vpop.f32.mrf.mxu2 }
 0x222   :  { %v731_v18 = vpop.f32.mrf.mxu2 }
 0x223   :  { %v754_v24 = vpack.c.bf16 %v731_v18, %v728_v7 }
 0x224   :  { %789 = vmatmul.bf16.gmra.mxu3 %v1804_v57 }
 0x22a   :  { %v734_v19 = vpop.f32.mrf.mxu2 }
 0x232   :  { %v737_v48 = vpop.f32.mrf.mxu2 }
 0x233   :  { %v755_v1 = vpack.c.bf16 %v737_v48, %v734_v19 }
 0x234   :  { %794 = vmatmul.bf16.gmra.mxu3 %v1810_v5 }
 0x235   :  { %845 = vmatpush.bf16.msrb.mxu0 %v755_v1 }
 0x239   :  { %846 = vmatpush.bf16.msrb.mxu0 %v754_v24 }
 0x23d   :  { %847 = vmatpush.bf16.msrb.mxu0 %v753_v51 }
 0x241   :  { %848 = vmatpush.bf16.msrb.mxu0 %v752_v52 }
 0x244   :  { %799 = vmatmul.bf16.gmra.mxu3 %v1816_v14 }
 0x245   :  { %849 = vmatpush.bf16.msrb.mxu0 %v751_v54 }
 0x249   :  { %850 = vmatpush.bf16.msrb.mxu0 %v750_v62 }
 0x24d   :  { %851 = vmatpush.bf16.msrb.mxu0 %v749_v63 }
 0x251   :  { %852 = vmatpush.bf16.msrb.mxu0 %v748_v2 }
 0x254   :  { %853 = vmatmul.bf16.vlgmr.msrb.gmra.mxu0 %v1776_v21  ;;  %804 = vmatmul.bf16.gmra.mxu3 %v1822_v22 }
 0x257   :  { %v765_v40 = vpop.f32.mrf.mxu3 }
 0x25f   :  { %v767_v29 = vpop.f32.mrf.mxu3 }
 0x264   :  { %858 = vmatmul.bf16.gmra.mxu0 %v1782_v27  ;;  %809 = vmatmul.bf16.gmra.mxu3 %v1828_v42 }
 0x267   :  { %v770_v30 = vpop.f32.mrf.mxu3 }
 0x26f   :  { %v772_v41 = vpop.f32.mrf.mxu3 }
 0x274   :  { %863 = vmatmul.bf16.gmra.mxu0 %v1788_v33  ;;  %814 = vmatmul.bf16.gmra.mxu3 %v1834_v60 }
 0x277   :  { %v775_v7 = vpop.f32.mrf.mxu3 }
 0x27f   :  { %v777_v18 = vpop.f32.mrf.mxu3 }
 0x284   :  { %868 = vmatmul.bf16.gmra.mxu0 %v1794_v39  ;;  %819 = vmatmul.bf16.gmra.mxu3 %v1840_v12 }
 0x287   :  { %v780_v24 = vpop.f32.mrf.mxu3 }
 0x28f   :  { %v782_v62 = vpop.f32.mrf.mxu3 }
 0x294   :  { %873 = vmatmul.bf16.gmra.mxu0 %v1800_v45  ;;  %824 = vmatmul.bf16.gmra.mxu3 %v1846_v36 }
 0x297   :  { %v785_v8 = vpop.f32.mrf.mxu3 }
 0x29f   :  { %v787_v25 = vpop.f32.mrf.mxu3 }
 0x2a4   :  { %878 = vmatmul.bf16.gmra.mxu0 %v1806_v58  ;;  %829 = vmatmul.bf16.gmra.mxu3 %v1852_v56 }
 0x2b4   :  { %883 = vmatmul.bf16.gmra.mxu0 %v1812_v6  ;;  %834 = vmatmul.bf16.gmra.mxu3 %v1858_v16 }
 0x2c4   :  { %888 = vmatmul.bf16.gmra.mxu0 %v1818_v15  ;;  %839 = vmatmul.bf16.gmra.mxu3 %v1864_v46 }
 0x2d1   :  { %v854_v19 = vpop.f32.mrf.mxu0 }
 0x2d2   :  { %v855_v48 = vadd.f32 %v854_v19, %v765_v40  ;;  %v790_v40 = vpop.f32.mrf.mxu3 }
 0x2d4   :  { %v934_v1 = vmax.f32 %v855_v48, 0.0  ;;  %893 = vmatmul.bf16.gmra.mxu0 %v1824_v23 }
 0x2d6   :  { %998 = vmatmul.f32.vlgmr.msrb.gmra.mxu1 %v934_v1 }
 0x2d9   :  { %v856_v51 = vpop.f32.mrf.mxu0 }
 0x2da   :  { %v857_v52 = vadd.f32 %v856_v51, %v767_v29  ;;  %v792_v29 = vpop.f32.mrf.mxu3 }
 0x2dc   :  { %v935_v54 = vmax.f32 %v857_v52, 0.0 }
 0x2de   :  { %1001 = vmatmul.f32.gmra.mxu1 %v935_v54 }
 0x2e1   :  { %v859_v63 = vpop.f32.mrf.mxu0 }
 0x2e2   :  { %v860_v2 = vadd.f32 %v859_v63, %v770_v30 }
 0x2e4   :  { %v936_v3 = vmax.f32 %v860_v2, 0.0  ;;  %898 = vmatmul.bf16.gmra.mxu0 %v1830_v43 }
 0x2e6   :  { %1004 = vmatmul.f32.gmra.mxu1 %v936_v3 }
 0x2e9   :  { %v861_v9 = vpop.f32.mrf.mxu0 }
 0x2ea   :  { %v862_v10 = vadd.f32 %v861_v9, %v772_v41  ;;  %v795_v41 = vpop.f32.mrf.mxu3 }
 0x2ec   :  { %v937_v11 = vmax.f32 %v862_v10, 0.0 }
 0x2ee   :  { %1007 = vmatmul.f32.gmra.mxu1 %v937_v11 }
 0x2f1   :  { %v864_v28 = vpop.f32.mrf.mxu0 }
 0x2f2   :  { %v865_v31 = vadd.f32 %v864_v28, %v775_v7 }
 0x2f4   :  { %v938_v34 = vmax.f32 %v865_v31, 0.0  ;;  %903 = vmatmul.bf16.gmra.mxu0 %v1836_v61 }
 0x2f6   :  { %1010 = vmatmul.f32.gmra.mxu1 %v938_v34 }
 0x2f9   :  { %v866_v50 = vpop.f32.mrf.mxu0 }
 0x2fa   :  { %v867_v35 = vadd.f32 %v866_v50, %v777_v18  ;;  %v797_v18 = vpop.f32.mrf.mxu3 }
 0x2fc   :  { %v939_v49 = vmax.f32 %v867_v35, 0.0 }
 0x2fe   :  { %1013 = vmatmul.f32.gmra.mxu1 %v939_v49 }
 0x301   :  { %v869_v55 = vpop.f32.mrf.mxu0 }
 0x302   :  { %v870_v4 = vadd.f32 %v869_v55, %v780_v24  ;;  %v800_v24 = vpop.f32.mrf.mxu3 }
 0x304   :  { %v940_v53 = vmax.f32 %v870_v4, 0.0  ;;  %908 = vmatmul.bf16.gmra.mxu0 %v1842_v13 }
 0x306   :  { %1016 = vmatmul.f32.gmra.mxu1 %v940_v53 }
 0x309   :  { %v871_v0 = vpop.f32.mrf.mxu0 }
 0x30a   :  { %v872_v30 = vadd.f32 %v871_v0, %v782_v62  ;;  %v802_v9 = vpop.f32.mrf.mxu3 }
 0x30c   :  { %v941_v7 = vmax.f32 %v872_v30, 0.0 }
 0x30e   :  { %1019 = vmatmul.f32.gmra.mxu1 %v941_v7 }
 0x311   :  { %v874_v19 = vpop.f32.mrf.mxu0 }
 0x312   :  { %v875_v48 = vadd.f32 %v874_v19, %v785_v8  ;;  %v805_v31 = vpop.f32.mrf.mxu3 }
 0x314   :  { %v942_v1 = vmax.f32 %v875_v48, 0.0  ;;  %913 = vmatmul.bf16.gmra.mxu0 %v1848_v37 }
 0x316   :  { %1022 = vmatmul.f32.gmra.mxu1 %v942_v1 }
 0x319   :  { %v876_v51 = vpop.f32.mrf.mxu0 }
 0x31a   :  { %v877_v52 = vadd.f32 %v876_v51, %v787_v25 }
 0x31c   :  { %v943_v54 = vmax.f32 %v877_v52, 0.0 }
 0x31e   :  { %1025 = vmatmul.f32.gmra.mxu1 %v943_v54 }
 0x321   :  { %v879_v63 = vpop.f32.mrf.mxu0 }
 0x322   :  { %v880_v2 = vadd.f32 %v879_v63, %v790_v40  ;;  %v807_v40 = vpop.f32.mrf.mxu3 }
 0x324   :  { %v944_v3 = vmax.f32 %v880_v2, 0.0  ;;  %918 = vmatmul.bf16.gmra.mxu0 %v1854_v59 }
 0x326   :  { %1028 = vmatmul.f32.gmra.mxu1 %v944_v3 }
 0x329   :  { %v881_v62 = vpop.f32.mrf.mxu0 }
 0x32a   :  { %v882_v10 = vadd.f32 %v881_v62, %v792_v29  ;;  %v810_v29 = vpop.f32.mrf.mxu3 }
 0x32c   :  { %v945_v8 = vmax.f32 %v882_v10, 0.0 }
 0x32e   :  { %1031 = vmatmul.f32.gmra.mxu1 %v945_v8 }
 0x331   :  { %v884_v11 = vpop.f32.mrf.mxu0 }
 0x332   :  { %v885_v28 = vadd.f32 %v884_v11, %v795_v41  ;;  %v812_v7 = vpop.f32.mrf.mxu3 }
 0x334   :  { %v946_v34 = vmax.f32 %v885_v28, 0.0  ;;  %923 = vmatmul.bf16.gmra.mxu0 %v1860_v17 }
 0x336   :  { %1034 = vmatmul.f32.gmra.mxu1 %v946_v34 }
 0x339   :  { %v886_v25 = vpop.f32.mrf.mxu0 }
 0x33a   :  { %v887_v50 = vadd.f32 %v886_v25, %v797_v18  ;;  %v815_v54 = vpop.f32.mrf.mxu3 }
 0x33c   :  { %v947_v35 = vmax.f32 %v887_v50, 0.0 }
 0x33e   :  { %1037 = vmatmul.f32.gmra.mxu1 %v947_v35 }
 0x341   :  { %v889_v49 = vpop.f32.mrf.mxu0 }
 0x342   :  { %v890_v55 = vadd.f32 %v889_v49, %v800_v24 }
 0x344   :  { %v948_v4 = vmax.f32 %v890_v55, 0.0  ;;  %928 = vmatmul.bf16.gmra.mxu0 %v1866_v47 }
 0x346   :  { %1040 = vmatmul.f32.gmra.mxu1 %v948_v4 }
 0x349   :  { %v891_v53 = vpop.f32.mrf.mxu0 }
 0x34a   :  { %v892_v0 = vadd.f32 %v891_v53, %v802_v9  ;;  %v817_v9 = vpop.f32.mrf.mxu3 }
 0x34c   :  { %v949_v30 = vmax.f32 %v892_v0, 0.0 }
 0x34e   :  { %1043 = vmatmul.f32.gmra.mxu1 %v949_v30 }
 0x351   :  { %v894_v41 = vpop.f32.mrf.mxu0 }
 0x352   :  { %v895_v19 = vadd.f32 %v894_v41, %v805_v31  ;;  %v820_v31 = vpop.f32.mrf.mxu3 }
 0x353   :  { %v1932_v48 = vpop.f32.mrf.mxu1 }
 0x354   :  { %v950_v1 = vmax.f32 %v895_v19, 0.0 }
 0x356   :  { %1046 = vmatmul.f32.gmra.mxu1 %v950_v1 }
 0x359   :  { %v896_v18 = vpop.f32.mrf.mxu0 }
 0x35a   :  { %v897_v51 = vadd.f32 %v896_v18, %v807_v40  ;;  %v822_v49 = vpop.f32.mrf.mxu3 }
 0x35b   :  { %v1934_v52 = vpop.f32.mrf.mxu1 }
 0x35c   :  { %v951_v24 = vmax.f32 %v897_v51, 0.0 }
 0x35e   :  { %1049 = vmatmul.f32.gmra.mxu1 %v951_v24 }
 0x361   :  { %v899_v63 = vpop.f32.mrf.mxu0 }
 0x362   :  { %v900_v2 = vadd.f32 %v899_v63, %v810_v29  ;;  %v825_v41 = vpop.f32.mrf.mxu3 }
 0x363   :  { %v1936_v3 = vpop.f32.mrf.mxu1 }
 0x364   :  { %v952_v62 = vmax.f32 %v900_v2, 0.0 }
 0x366   :  { %1052 = vmatmul.f32.gmra.mxu1 %v952_v62 }
 0x369   :  { %v901_v10 = vpop.f32.mrf.mxu0 }
 0x36a   :  { %v902_v8 = vadd.f32 %v901_v10, %v812_v7 }
 0x36b   :  { %v1938_v11 = vpop.f32.mrf.mxu1 }
 0x36c   :  { %v953_v28 = vmax.f32 %v902_v8, 0.0 }
 0x36e   :  { %1055 = vmatmul.f32.gmra.mxu1 %v953_v28 }
 0x371   :  { %v904_v34 = vpop.f32.mrf.mxu0 }
 0x372   :  { %v905_v25 = vadd.f32 %v904_v34, %v815_v54  ;;  %v827_v54 = vpop.f32.mrf.mxu3 }
 0x373   :  { %v1940_v50 = vpop.f32.mrf.mxu1 }
 0x374   :  { %v954_v35 = vmax.f32 %v905_v25, 0.0 }
 0x376   :  { %1058 = vmatmul.f32.gmra.mxu1 %v954_v35 }
 0x379   :  { %v906_v40 = vpop.f32.mrf.mxu0 }
 0x37a   :  { %v907_v55 = vadd.f32 %v906_v40, %v817_v9  ;;  %v830_v9 = vpop.f32.mrf.mxu3 }
 0x37b   :  { %v1942_v4 = vpop.f32.mrf.mxu1 }
 0x37c   :  { %v955_v29 = vmax.f32 %v907_v55, 0.0 }
 0x37e   :  { %1061 = vmatmul.f32.gmra.mxu1 %v955_v29 }
 0x381   :  { %v909_v53 = vpop.f32.mrf.mxu0 }
 0x382   :  { %v910_v0 = vadd.f32 %v909_v53, %v820_v31  ;;  %v832_v34 = vpop.f32.mrf.mxu3 }
 0x383   :  { %v1944_v30 = vpop.f32.mrf.mxu1 }
 0x384   :  { %v956_v7 = vmax.f32 %v910_v0, 0.0 }
 0x386   :  { %1064 = vmatmul.f32.gmra.mxu1 %v956_v7 }
 0x389   :  { %v911_v19 = vpop.f32.mrf.mxu0 }
 0x38a   :  { %v912_v1 = vadd.f32 %v911_v19, %v822_v49  ;;  %v835_v53 = vpop.f32.mrf.mxu3 }
 0x38b   :  { %v1020_v18 = vpop.f32.mrf.mxu1 }
 0x38c   :  { %v957_v51 = vmax.f32 %v912_v1, 0.0 }
 0x38e   :  { %1067 = vmatmul.f32.gmra.mxu1 %v957_v51 }
 0x391   :  { %v914_v24 = vpop.f32.mrf.mxu0 }
 0x392   :  { %v915_v63 = vadd.f32 %v914_v24, %v825_v41 }
 0x393   :  { %v1023_v2 = vpop.f32.mrf.mxu1 }
 0x394   :  { %v958_v62 = vmax.f32 %v915_v63, 0.0 }
 0x396   :  { %1070 = vmatmul.f32.gmra.mxu1 %v958_v62 }
 0x399   :  { %v916_v10 = vpop.f32.mrf.mxu0 }
 0x39a   :  { %v917_v8 = vadd.f32 %v916_v10, %v827_v54  ;;  %v837_v54 = vpop.f32.mrf.mxu3 }
 0x39b   :  { %v1026_v28 = vpop.f32.mrf.mxu1 }
 0x39c   :  { %v959_v31 = vmax.f32 %v917_v8, 0.0 }
 0x39e   :  { %1073 = vmatmul.f32.gmra.mxu1 %v959_v31 }
 0x3a1   :  { %v919_v25 = vpop.f32.mrf.mxu0 }
 0x3a2   :  { %v920_v35 = vadd.f32 %v919_v25, %v830_v9  ;;  %v840_v9 = vpop.f32.mrf.mxu3 }
 0x3a3   :  { %v1029_v40 = vpop.f32.mrf.mxu1 }
 0x3a4   :  { %v960_v49 = vmax.f32 %v920_v35, 0.0 }
 0x3a6   :  { %1076 = vmatmul.f32.gmra.mxu1 %v960_v49 }
 0x3a9   :  { %v921_v55 = vpop.f32.mrf.mxu0 }
 0x3aa   :  { %v922_v29 = vadd.f32 %v921_v55, %v832_v34  ;;  %v842_v35 = vpop.f32.mrf.mxu3 }
 0x3ab   :  { %v1032_v0 = vpop.f32.mrf.mxu1 }
 0x3ac   :  { %v961_v41 = vmax.f32 %v922_v29, 0.0 }
 0x3ae   :  { %1079 = vmatmul.f32.gmra.mxu1 %v961_v41 }
 0x3b1   :  { %v924_v7 = vpop.f32.mrf.mxu0 }
 0x3b2   :  { %v925_v19 = vadd.f32 %v924_v7, %v835_v53 }
 0x3b3   :  { %v1035_v1 = vpop.f32.mrf.mxu1 }
 0x3b4   :  { %v962_v51 = vmax.f32 %v925_v19, 0.0 }
 0x3b6   :  { %1082 = vmatmul.f32.gmra.mxu1 %v962_v51  ;;  %v1100_v51 = vpack.c.bf16 %v1032_v0, %v1029_v40  ;;  %v1095_v40 = vpack.c.bf16 %v1934_v52, %v1932_v48 }
 0x3b9   :  { %v926_v24 = vpop.f32.mrf.mxu0 }
 0x3ba   :  { %v927_v63 = vadd.f32 %v926_v24, %v837_v54  ;;  %v1099_v54 = vpack.c.bf16 %v1026_v28, %v1023_v2 }
 0x3bb   :  { %v1038_v62 = vpop.f32.mrf.mxu1 }
 0x3bc   :  { %v963_v10 = vmax.f32 %v927_v63, 0.0  ;;  %v1101_v7 = vpack.c.bf16 %v1038_v62, %v1035_v1 }
 0x3be   :  { %1085 = vmatmul.f32.gmra.mxu1 %v963_v10  ;;  %v1098_v10 = vpack.c.bf16 %v1020_v18, %v1944_v30 }
 0x3c1   :  { %v929_v8 = vpop.f32.mrf.mxu0 }
 0x3c2   :  { %v930_v31 = vadd.f32 %v929_v8, %v840_v9  ;;  %v1097_v9 = vpack.c.bf16 %v1942_v4, %v1940_v50 }
 0x3c3   :  { %v1041_v25 = vpop.f32.mrf.mxu1 }
 0x3c4   :  { %v964_v34 = vmax.f32 %v930_v31, 0.0  ;;  %v1096_v31 = vpack.c.bf16 %v1938_v11, %v1936_v3 }
 0x3c6   :  { %1088 = vmatmul.f32.gmra.mxu1 %v964_v34 }
 0x3c9   :  { %v931_v49 = vpop.f32.mrf.mxu0 }
 0x3ca   :  { %v932_v55 = vadd.f32 %v931_v49, %v842_v35 }
 0x3cb   :  { %v1044_v29 = vpop.f32.mrf.mxu1 }
 0x3cc   :  { %v965_v53 = vmax.f32 %v932_v55, 0.0  ;;  %v1102_v41 = vpack.c.bf16 %v1044_v29, %v1041_v25 }
 0x3ce   :  { %1091 = vmatmul.f32.gmra.mxu1 %v965_v53  ;;  %1111 = vmatpush.bf16.msrb.mxu2 %v1102_v41 }
 0x3d2   :  { %1112 = vmatpush.bf16.msrb.mxu2 %v1101_v7 }
 0x3d3   :  { %v1047_v19 = vpop.f32.mrf.mxu1 }
 0x3d6   :  { %1113 = vmatpush.bf16.msrb.mxu2 %v1100_v51 }
 0x3da   :  { %1114 = vmatpush.bf16.msrb.mxu2 %v1099_v54 }
 0x3db   :  { %v1050_v24 = vpop.f32.mrf.mxu1 }
 0x3dc   :  { %v1103_v63 = vpack.c.bf16 %v1050_v24, %v1047_v19 }
 0x3de   :  { %1115 = vmatpush.bf16.msrb.mxu2 %v1098_v10 }
 0x3e2   :  { %1116 = vmatpush.bf16.msrb.mxu2 %v1097_v9 }
 0x3e3   :  { %v1053_v8 = vpop.f32.mrf.mxu1 }
 0x3e6   :  { %1117 = vmatpush.bf16.msrb.mxu2 %v1096_v31 }
 0x3ea   :  { %1118 = vmatpush.bf16.msrb.mxu2 %v1095_v40 }
 0x3eb   :  { %v1056_v2 = vpop.f32.mrf.mxu1 }
 0x3ec   :  { %v1104_v28 = vpack.c.bf16 %v1056_v2, %v1053_v8 }
 0x3ed   :  { %1119 = vmatmul.bf16.vlgmr.msrb.gmra.mxu2 %v1774_v20 }
 0x3f3   :  { %v1059_v0 = vpop.f32.mrf.mxu1 }
 0x3fb   :  { %v1062_v30 = vpop.f32.mrf.mxu1 }
 0x3fc   :  { %v1105_v18 = vpack.c.bf16 %v1062_v30, %v1059_v0 }
 0x3fd   :  { %1124 = vmatmul.bf16.gmra.mxu2 %v1780_v26 }
 0x403   :  { %v1065_v50 = vpop.f32.mrf.mxu1 }
 0x40b   :  { %v1068_v4 = vpop.f32.mrf.mxu1 }
 0x40c   :  { %v1106_v1 = vpack.c.bf16 %v1068_v4, %v1065_v50 }
 0x40d   :  { %1129 = vmatmul.bf16.gmra.mxu2 %v1786_v32 }
 0x413   :  { %v1071_v3 = vpop.f32.mrf.mxu1 }
 0x41b   :  { %v1074_v11 = vpop.f32.mrf.mxu1 }
 0x41c   :  { %v1107_v49 = vpack.c.bf16 %v1074_v11, %v1071_v3 }
 0x41d   :  { %1134 = vmatmul.bf16.gmra.mxu2 %v1792_v38 }
 0x423   :  { %v1077_v48 = vpop.f32.mrf.mxu1 }
 0x42b   :  { %v1080_v52 = vpop.f32.mrf.mxu1 }
 0x42c   :  { %v1108_v32 = vpack.c.bf16 %v1080_v52, %v1077_v48 }
 0x42d   :  { %1139 = vmatmul.bf16.gmra.mxu2 %v1798_v44 }
 0x433   :  { %v1083_v62 = vpop.f32.mrf.mxu1 }
 0x43b   :  { %v1086_v20 = vpop.f32.mrf.mxu1 }
 0x43c   :  { %v1109_v35 = vpack.c.bf16 %v1086_v20, %v1083_v62 }
 0x43d   :  { %1144 = vmatmul.bf16.gmra.mxu2 %v1804_v57 }
 0x443   :  { %v1089_v25 = vpop.f32.mrf.mxu1 }
 0x44b   :  { %v1092_v34 = vpop.f32.mrf.mxu1 }
 0x44c   :  { %v1110_v26 = vpack.c.bf16 %v1092_v34, %v1089_v25 }
 0x44d   :  { %1149 = vmatmul.bf16.gmra.mxu2 %v1810_v5 }
 0x44e   :  { %1200 = vmatpush.bf16.msrb.mxu3 %v1110_v26 }
 0x452   :  { %1201 = vmatpush.bf16.msrb.mxu3 %v1109_v35 }
 0x456   :  { %1202 = vmatpush.bf16.msrb.mxu3 %v1108_v32 }
 0x45a   :  { %1203 = vmatpush.bf16.msrb.mxu3 %v1107_v49 }
 0x45d   :  { %1154 = vmatmul.bf16.gmra.mxu2 %v1816_v14 }
 0x45e   :  { %1204 = vmatpush.bf16.msrb.mxu3 %v1106_v1 }
 0x462   :  { %1205 = vmatpush.bf16.msrb.mxu3 %v1105_v18 }
 0x466   :  { %1206 = vmatpush.bf16.msrb.mxu3 %v1104_v28 }
 0x46a   :  { %1207 = vmatpush.bf16.msrb.mxu3 %v1103_v63 }
 0x46d   :  { %1208 = vmatmul.bf16.vlgmr.msrb.gmra.mxu3 %v1776_v21  ;;  %1159 = vmatmul.bf16.gmra.mxu2 %v1822_v22 }
 0x470   :  { %v1120_v38 = vpop.f32.mrf.mxu2 }
 0x478   :  { %v1122_v21 = vpop.f32.mrf.mxu2 }
 0x47d   :  { %1213 = vmatmul.bf16.gmra.mxu3 %v1782_v27  ;;  %1164 = vmatmul.bf16.gmra.mxu2 %v1828_v42 }
 0x480   :  { %v1125_v27 = vpop.f32.mrf.mxu2 }
 0x48d   :  { %1218 = vmatmul.bf16.gmra.mxu3 %v1788_v33  ;;  %1169 = vmatmul.bf16.gmra.mxu2 %v1834_v60  ;;  %v1127_v33 = vpop.f32.mrf.mxu2 }
 0x495   :  { %v1130_v44 = vpop.f32.mrf.mxu2 }
 0x49d   :  { %1223 = vmatmul.bf16.gmra.mxu3 %v1794_v39  ;;  %1174 = vmatmul.bf16.gmra.mxu2 %v1840_v12  ;;  %v1132_v57 = vpop.f32.mrf.mxu2 }
 0x4a5   :  { %v1135_v5 = vpop.f32.mrf.mxu2 }
 0x4ad   :  { %1228 = vmatmul.bf16.gmra.mxu3 %v1800_v45  ;;  %1179 = vmatmul.bf16.gmra.mxu2 %v1846_v36 }
 0x4bd   :  { %1233 = vmatmul.bf16.gmra.mxu3 %v1806_v58  ;;  %1184 = vmatmul.bf16.gmra.mxu2 %v1852_v56 }
 0x4cd   :  { %1238 = vmatmul.bf16.gmra.mxu3 %v1812_v6  ;;  %1189 = vmatmul.bf16.gmra.mxu2 %v1858_v16 }
 0x4dd   :  { %1243 = vmatmul.bf16.gmra.mxu3 %v1818_v15  ;;  %v1137_v15 = vpop.f32.mrf.mxu2  ;;  %1194 = vmatmul.bf16.gmra.mxu2 %v1864_v46 }
 0x4ed   :  { %1248 = vmatmul.bf16.gmra.mxu3 %v1824_v23  ;;  %v1140_v23 = vpop.f32.mrf.mxu2 }
 0x4f0   :  { %v1209_v39 = vpop.f32.mrf.mxu3 }
 0x4f1   :  { %v1210_v45 = vadd.f32 %v1209_v39, %v1120_v38 }
 0x4f3   :  { %1289 = vst [vmem:[#allocation10] sm:$0xff] %v1210_v45 }
 0x4f5   :  { %v1142_v36 = vpop.f32.mrf.mxu2 }
 0x4f8   :  { %v1211_v58 = vpop.f32.mrf.mxu3 }
 0x4f9   :  { %v1212_v6 = vadd.f32 %v1211_v58, %v1122_v21 }
 0x4fb   :  { %1290 = vst [vmem:[#allocation10 + $0x8] sm:$0xff] %v1212_v6 }
 0x4fd   :  { %1253 = vmatmul.bf16.gmra.mxu3 %v1830_v43  ;;  %v1145_v55 = vpop.f32.mrf.mxu2 }
 0x500   :  { %v1214_v14 = vpop.f32.mrf.mxu3 }
 0x501   :  { %v1215_v22 = vadd.f32 %v1214_v14, %v1125_v27 }
 0x503   :  { %1291 = vst [vmem:[#allocation10 + $0x10] sm:$0xff] %v1215_v22 }
 0x505   :  { %v1147_v46 = vpop.f32.mrf.mxu2 }
 0x508   :  { %v1216_v42 = vpop.f32.mrf.mxu3 }
 0x509   :  { %v1217_v60 = vadd.f32 %v1216_v42, %v1127_v33 }
 0x50b   :  { %1292 = vst [vmem:[#allocation10 + $0x18] sm:$0xff] %v1217_v60 }
 0x50d   :  { %1258 = vmatmul.bf16.gmra.mxu3 %v1836_v61  ;;  %v1150_v19 = vpop.f32.mrf.mxu2 }
 0x510   :  { %v1219_v12 = vpop.f32.mrf.mxu3 }
 0x511   :  { %v1220_v56 = vadd.f32 %v1219_v12, %v1130_v44 }
 0x513   :  { %1293 = vst [vmem:[#allocation10 + $0x20] sm:$0xff] %v1220_v56 }
 0x515   :  { %v1152_v54 = vpop.f32.mrf.mxu2 }
 0x518   :  { %v1221_v16 = vpop.f32.mrf.mxu3 }
 0x519   :  { %v1222_v29 = vadd.f32 %v1221_v16, %v1132_v57 }
 0x51b   :  { %1294 = vst [vmem:[#allocation10 + $0x28] sm:$0xff] %v1222_v29 }
 0x51d   :  { %1263 = vmatmul.bf16.gmra.mxu3 %v1842_v13  ;;  %v1155_v13 = vpop.f32.mrf.mxu2 }
 0x520   :  { %v1224_v43 = vpop.f32.mrf.mxu3 }
 0x521   :  { %v1225_v53 = vadd.f32 %v1224_v43, %v1135_v5 }
 0x523   :  { %1295 = vst [vmem:[#allocation10 + $0x30] sm:$0xff] %v1225_v53 }
 0x525   :  { %v1157_v31 = vpop.f32.mrf.mxu2 }
 0x528   :  { %v1226_v41 = vpop.f32.mrf.mxu3 }
 0x529   :  { %v1227_v7 = vadd.f32 %v1226_v41, %v1137_v15 }
 0x52b   :  { %1296 = vst [vmem:[#allocation10 + $0x38] sm:$0xff] %v1227_v7 }
 0x52d   :  { %1268 = vmatmul.bf16.gmra.mxu3 %v1848_v37  ;;  %v1160_v28 = vpop.f32.mrf.mxu2 }
 0x530   :  { %v1229_v61 = vpop.f32.mrf.mxu3 }
 0x531   :  { %v1230_v51 = vadd.f32 %v1229_v61, %v1140_v23 }
 0x533   :  { %1297 = vst [vmem:[#allocation10 + $0x40] sm:$0xff] %v1230_v51 }
 0x535   :  { %v1162_v18 = vpop.f32.mrf.mxu2 }
 0x538   :  { %v1231_v24 = vpop.f32.mrf.mxu3 }
 0x539   :  { %v1232_v63 = vadd.f32 %v1231_v24, %v1142_v36 }
 0x53b   :  { %1298 = vst [vmem:[#allocation10 + $0x48] sm:$0xff] %v1232_v63 }
 0x53d   :  { %1273 = vmatmul.bf16.gmra.mxu3 %v1854_v59  ;;  %v1165_v4 = vpop.f32.mrf.mxu2 }
 0x540   :  { %v1234_v10 = vpop.f32.mrf.mxu3 }
 0x541   :  { %v1235_v9 = vadd.f32 %v1234_v10, %v1145_v55 }
 0x543   :  { %1299 = vst [vmem:[#allocation10 + $0x50] sm:$0xff] %v1235_v9 }
 0x545   :  { %v1167_v48 = vpop.f32.mrf.mxu2 }
 0x548   :  { %v1236_v8 = vpop.f32.mrf.mxu3 }
 0x549   :  { %v1237_v40 = vadd.f32 %v1236_v8, %v1147_v46 }
 0x54b   :  { %1300 = vst [vmem:[#allocation10 + $0x58] sm:$0xff] %v1237_v40 }
 0x54d   :  { %1278 = vmatmul.bf16.gmra.mxu3 %v1860_v17  ;;  %v1170_v20 = vpop.f32.mrf.mxu2 }
 0x550   :  { %v1239_v37 = vpop.f32.mrf.mxu3 }
 0x551   :  { %v1240_v2 = vadd.f32 %v1239_v37, %v1150_v19 }
 0x553   :  { %1301 = vst [vmem:[#allocation10 + $0x60] sm:$0xff] %v1240_v2 }
 0x555   :  { %v1172_v26 = vpop.f32.mrf.mxu2 }
 0x558   :  { %v1241_v0 = vpop.f32.mrf.mxu3 }
 0x559   :  { %v1242_v30 = vadd.f32 %v1241_v0, %v1152_v54 }
 0x55b   :  { %1302 = vst [vmem:[#allocation10 + $0x68] sm:$0xff] %v1242_v30 }
 0x55d   :  { %1283 = vmatmul.bf16.gmra.mxu3 %v1866_v47  ;;  %v1175_v32 = vpop.f32.mrf.mxu2 }
 0x560   :  { %v1244_v59 = vpop.f32.mrf.mxu3 }
 0x561   :  { %v1245_v50 = vadd.f32 %v1244_v59, %v1155_v13 }
 0x563   :  { %1303 = vst [vmem:[#allocation10 + $0x70] sm:$0xff] %v1245_v50 }
 0x565   :  { %v1177_v27 = vpop.f32.mrf.mxu2 }
 0x568   :  { %v1246_v1 = vpop.f32.mrf.mxu3 }
 0x569   :  { %v1247_v3 = vadd.f32 %v1246_v1, %v1157_v31 }
 0x56b   :  { %1304 = vst [vmem:[#allocation10 + $0x78] sm:$0xff] %v1247_v3 }
 0x56d   :  { %v1180_v57 = vpop.f32.mrf.mxu2 }
 0x570   :  { %v1249_v11 = vpop.f32.mrf.mxu3 }
 0x571   :  { %v1250_v17 = vadd.f32 %v1249_v11, %v1160_v28 }
 0x573   :  { %1305 = vst [vmem:[#allocation10 + $0x80] sm:$0xff] %v1250_v17 }
 0x575   :  { %v1182_v5 = vpop.f32.mrf.mxu2 }
 0x578   :  { %v1251_v52 = vpop.f32.mrf.mxu3 }
 0x579   :  { %v1252_v62 = vadd.f32 %v1251_v52, %v1162_v18 }
 0x57b   :  { %1306 = vst [vmem:[#allocation10 + $0x88] sm:$0xff] %v1252_v62 }
 0x57d   :  { %v1185_v15 = vpop.f32.mrf.mxu2 }
 0x580   :  { %v1254_v25 = vpop.f32.mrf.mxu3 }
 0x581   :  { %v1255_v34 = vadd.f32 %v1254_v25, %v1165_v4 }
 0x583   :  { %1307 = vst [vmem:[#allocation10 + $0x90] sm:$0xff] %v1255_v34 }
 0x585   :  { %v1187_v60 = vpop.f32.mrf.mxu2 }
 0x588   :  { %v1256_v47 = vpop.f32.mrf.mxu3 }
 0x589   :  { %v1257_v35 = vadd.f32 %v1256_v47, %v1167_v48 }
 0x58b   :  { %1308 = vst [vmem:[#allocation10 + $0x98] sm:$0xff] %v1257_v35 }
 0x58d   :  { %v1190_v16 = vpop.f32.mrf.mxu2 }
 0x590   :  { %v1259_v49 = vpop.f32.mrf.mxu3 }
 0x591   :  { %v1260_v38 = vadd.f32 %v1259_v49, %v1170_v20 }
 0x593   :  { %1309 = vst [vmem:[#allocation10 + $0xa0] sm:$0xff] %v1260_v38 }
 0x595   :  { %v1192_v43 = vpop.f32.mrf.mxu2 }
 0x598   :  { %v1261_v21 = vpop.f32.mrf.mxu3 }
 0x599   :  { %v1262_v33 = vadd.f32 %v1261_v21, %v1172_v26 }
 0x59b   :  { %1310 = vst [vmem:[#allocation10 + $0xa8] sm:$0xff] %v1262_v33 }
 0x59d   :  { %v1195_v41 = vpop.f32.mrf.mxu2 }
 0x5a0   :  { %v1264_v44 = vpop.f32.mrf.mxu3 }
 0x5a1   :  { %v1265_v39 = vadd.f32 %v1264_v44, %v1175_v32 }
 0x5a3   :  { %1311 = vst [vmem:[#allocation10 + $0xb0] sm:$0xff] %v1265_v39 }
 0x5a5   :  { %v1197_v61 = vpop.f32.mrf.mxu2 }
 0x5a8   :  { %v1266_v45 = vpop.f32.mrf.mxu3 }
 0x5a9   :  { %v1267_v58 = vadd.f32 %v1266_v45, %v1177_v27 }
 0x5ab   :  { %1312 = vst [vmem:[#allocation10 + $0xb8] sm:$0xff] %v1267_v58 }
 0x5b0   :  { %v1269_v6 = vpop.f32.mrf.mxu3 }
 0x5b1   :  { %v1270_v14 = vadd.f32 %v1269_v6, %v1180_v57 }
 0x5b3   :  { %1313 = vst [vmem:[#allocation10 + $0xc0] sm:$0xff] %v1270_v14 }
 0x5b8   :  { %v1271_v22 = vpop.f32.mrf.mxu3 }
 0x5b9   :  { %v1272_v42 = vadd.f32 %v1271_v22, %v1182_v5 }
 0x5bb   :  { %1314 = vst [vmem:[#allocation10 + $0xc8] sm:$0xff] %v1272_v42 }
 0x5c0   :  { %v1274_v23 = vpop.f32.mrf.mxu3 }
 0x5c1   :  { %v1275_v12 = vadd.f32 %v1274_v23, %v1185_v15 }
 0x5c3   :  { %1315 = vst [vmem:[#allocation10 + $0xd0] sm:$0xff] %v1275_v12 }
 0x5c8   :  { %v1276_v36 = vpop.f32.mrf.mxu3 }
 0x5c9   :  { %v1277_v56 = vadd.f32 %v1276_v36, %v1187_v60 }
 0x5cb   :  { %1316 = vst [vmem:[#allocation10 + $0xd8] sm:$0xff] %v1277_v56 }
 0x5d0   :  { %v1279_v55 = vpop.f32.mrf.mxu3 }
 0x5d1   :  { %v1280_v29 = vadd.f32 %v1279_v55, %v1190_v16 }
 0x5d3   :  { %1317 = vst [vmem:[#allocation10 + $0xe0] sm:$0xff] %v1280_v29 }
 0x5d8   :  { %v1281_v46 = vpop.f32.mrf.mxu3 }
 0x5d9   :  { %v1282_v53 = vadd.f32 %v1281_v46, %v1192_v43 }
 0x5db   :  { %1318 = vst [vmem:[#allocation10 + $0xe8] sm:$0xff] %v1282_v53 }
 0x5e0   :  { %v1284_v7 = vpop.f32.mrf.mxu3 }
 0x5e1   :  { %v1285_v19 = vadd.f32 %v1284_v7, %v1195_v41 }
 0x5e3   :  { %1319 = vst [vmem:[#allocation10 + $0xf0] sm:$0xff] %v1285_v19 }
 0x5e8   :  { %v1286_v51 = vpop.f32.mrf.mxu3 }
 0x5e9   :  { %v1287_v54 = vadd.f32 %v1286_v51, %v1197_v61 }
 0x5eb   :  { %1320 = vst [vmem:[#allocation10 + $0xf8] sm:$0xff] %v1287_v54 }
 0x5ec   :  { %1333 = dma.vmem_to_hbm [thread:$0]  %s1326_s3, 4096, %s1328_s13, [#allocation4], %s1723_s27, %s1723_s27, %s1724_s28  }
 0x5ed   :  { %1717 = dma.done.wait [#allocation4], 4096  }
 0x5ee   :  { %1718 = vsyncadd [#allocation4], 4294963200 }
 0x5ef   :  { %1338 = vsyncpa [#allocation3], 1 }
 0x5f0   :  { %1339 = vsyncpa [#allocation6], 1 }
 0x5f1   :  { %1340 = vsyncpa [#allocation9], 1 }
 0x5f2   :  { %1341 = vsyncpa [#allocation4], 1 }

</bundles_post_ra>
